<compile_context>
chip_gen: v7x
topology: tpu7x:2x2x1
jax: 0.10.0
libtpu: 0.0.40
codegen_flags: <defaults>
</compile_context>

<pallas_src>
import jax
import jax.numpy as jnp
from jax.experimental import pallas as pl
from jax.experimental.pallas import tpu as pltpu

BN_EPS = 1e-5


# ---------------------------------------------------------------------------
# Kernel 1: fused 1x1-conv attention chain + channel-attention combine
# ---------------------------------------------------------------------------
def _bilocal_attention_kernel(xh_ref, xl_ref,
                              wfh_ref, sbfh_ref,
                              w1_ref, sb1_ref,
                              w2_ref, sb2_ref,
                              o_ref):
    co = o_ref.shape[1]
    xh = xh_ref[...]                                    # [TM, Ch] bf16
    xl = xl_ref[...]                                    # [TM, Cl] bf16

    # feature_high: 1x1 conv + folded BN + ReLU (f32 epilogue)
    xh_f = jnp.dot(xh, wfh_ref[...], preferred_element_type=jnp.float32)
    xh_f = jnp.maximum(xh_f * sbfh_ref[0:1, :] + sbfh_ref[1:2, :], 0.0)

    # packed topdown|bottomup stage 1: [xh_f | xl] @ block_diag(w_td1, w_bu1)
    cat = jnp.concatenate([xh_f.astype(jnp.bfloat16), xl], axis=-1)
    y1 = jnp.dot(cat, w1_ref[...], preferred_element_type=jnp.float32)
    y1 = jnp.maximum(y1 * sb1_ref[0:1, :] + sb1_ref[1:2, :], 0.0)

    # packed stage 2 + single sigmoid: [t | u] @ block_diag(w_td2, w_bu2)
    y2 = jnp.dot(y1.astype(jnp.bfloat16), w2_ref[...],
                 preferred_element_type=jnp.float32)
    y2 = y2 * sb2_ref[0:1, :] + sb2_ref[1:2, :]
    gate = pl.reciprocal(1.0 + jnp.exp(-y2), approx=True)   # sigmoid on the EUP
    td = gate[:, :co]
    bu = gate[:, co:]

    xl_f = xl.astype(jnp.float32)
    o_ref[...] = (2.0 * xl_f * td + 2.0 * xh_f * bu).astype(o_ref.dtype)


def _pick_row_tile(m):
    # Large tiles amortise the per-step pipeline overhead; keep >=2 grid steps
    # (megacore) when possible.  Non-divisible M is handled by a masked tail.
    for t in (4096, 2048, 1024, 512, 256, 128, 64, 32, 16, 8):
        if t <= m and pl.cdiv(m, t) >= 2:
            return t
    return m                                   # tiny M: single full-extent block


def bilocal_attention(xh2, xl2, p):
    """xh2: [M, Ch] bf16, xl2: [M, Cl] bf16  ->  combined feature [M, Co] bf16."""
    M, ch = xh2.shape
    cl = xl2.shape[1]
    co = p["fh_sb"].shape[1]
    tm = _pick_row_tile(M)

    weights = [p["fh_w"], p["fh_sb"], p["p1_w"], p["p1_sb"], p["p2_w"], p["p2_sb"]]

    def full_spec(a):
        return pl.BlockSpec(a.shape, lambda i: (0, 0))

    return pl.pallas_call(
        _bilocal_attention_kernel,
        out_shape=jax.ShapeDtypeStruct((M, co), jnp.bfloat16),
        grid=(pl.cdiv(M, tm),),
        in_specs=[pl.BlockSpec((tm, ch), lambda i: (i, 0)),
                  pl.BlockSpec((tm, cl), lambda i: (i, 0))]
                 + [full_spec(w) for w in weights],
        out_specs=pl.BlockSpec((tm, co), lambda i: (i, 0)),
        compiler_params=pltpu.CompilerParams(dimension_semantics=("parallel",)),
    )(xh2, xl2, *weights)


# ---------------------------------------------------------------------------
# Kernel 2: post = 3x3 conv (pad=1) + BN + ReLU
#   - inputs: three row-shifted views (di = 0,1,2 image rows) of the flattened
#     zero-padded image; all 9 taps collapse into ONE (TQ,3C)@(3C,3Co) matmul.
#   - the dj (+0,+1,+2) column shifts are applied to the matmul OUTPUT with
#     wrapped row shifts; wrap garbage only lands in the padded columns that are
#     sliced off afterwards (block row-starts are multiples of wp and wp >= W+2).
# ---------------------------------------------------------------------------
def _post_conv3x3_kernel(x0_ref, x1_ref, x2_ref, w_ref, sb_ref, o_ref):
    co = o_ref.shape[2]
    x96 = jnp.concatenate([x0_ref[0], x1_ref[0], x2_ref[0]], axis=-1)  # (TQ,3C) bf16
    z = jnp.dot(x96, w_ref[...], preferred_element_type=jnp.float32)   # (TQ,3Co)
    z0 = z[:, 0:co]
    z1 = z[:, co:2 * co]
    z2 = z[:, 2 * co:3 * co]
    # out[r] = z0[r] + z1[r+1] + z2[r+2]; wrapped rows at the block end are
    # garbage but correspond to padded (discarded) columns only.
    acc = (z0
           + jnp.concatenate([z1[1:, :], z1[:1, :]], axis=0)
           + jnp.concatenate([z2[2:, :], z2[:2, :]], axis=0))
    y = acc * sb_ref[0:1, :] + sb_ref[1:2, :]
    o_ref[0] = jnp.maximum(y, 0.0)


def post_conv3x3(xs, w_packed, sb):
    """xs: [B, H, W, C] bf16 -> [B, H, W, Co] f32."""
    B, H, W, C = xs.shape
    co = sb.shape[1]
    wp = ((W + 2 + 7) // 8) * 8          # padded width, multiple of 8, >= W+2
    L = H * wp                           # output rows on the padded-width grid

    # TODO(synk): pad/flatten + the 3 row-shifted views are XLA glue (extra HBM
    # passes) traded against removing all in-kernel halo / unaligned relayouts.
    xpad = jnp.pad(xs, ((0, 0), (1, 1), (1, wp - W - 1), (0, 0)))   # [B,H+2,wp,C]
    xflat = xpad.reshape(B, (H + 2) * wp, C)
    x0 = xflat[:, 0:L]                   # di = 0
    x1 = xflat[:, wp:wp + L]             # di = 1
    x2 = xflat[:, 2 * wp:2 * wp + L]     # di = 2

    # Row tile = whole padded image rows so block starts stay multiples of wp.
    k = max(1, min(max(1, H // 2), max(1, 2048 // wp)))
    tq = k * wp

    row_map = lambda b, q: (b, q, 0)
    out = pl.pallas_call(
        _post_conv3x3_kernel,
        out_shape=jax.ShapeDtypeStruct((B, L, co), jnp.float32),
        grid=(B, pl.cdiv(L, tq)),
        in_specs=[pl.BlockSpec((1, tq, C), row_map),
                  pl.BlockSpec((1, tq, C), row_map),
                  pl.BlockSpec((1, tq, C), row_map),
                  pl.BlockSpec(w_packed.shape, lambda b, q: (0, 0)),
                  pl.BlockSpec(sb.shape, lambda b, q: (0, 0))],
        out_specs=pl.BlockSpec((1, tq, co), row_map),
        compiler_params=pltpu.CompilerParams(
            dimension_semantics=("parallel", "parallel")),
    )(x0, x1, x2, w_packed, sb)

    # Drop the padded (garbage) columns.
    return out.reshape(B, H, wp, co)[:, :, :W, :]


# ---------------------------------------------------------------------------
# Parameters (inference-mode BN folded into per-channel scale/shift)
# ---------------------------------------------------------------------------
def _fold_bn(key, cout, conv_b):
    kg, kb, km, kv = jax.random.split(key, 4)
    gamma = 1.0 + 0.1 * jax.random.normal(kg, (cout,), jnp.float32)
    beta = 0.1 * jax.random.normal(kb, (cout,), jnp.float32)
    mean = 0.1 * jax.random.normal(km, (cout,), jnp.float32)
    var = 1.0 + 0.1 * jax.random.uniform(kv, (cout,), jnp.float32)
    scale = gamma / jnp.sqrt(var + BN_EPS)
    shift = beta - mean * scale + conv_b * scale
    return jnp.stack([scale, shift]).astype(jnp.float32)          # (2, cout)


def _conv1x1_bn(key, cin, cout):
    kw, kb, kbn = jax.random.split(key, 3)
    w = 0.1 * jax.random.normal(kw, (cin, cout), jnp.float32)
    b = 0.1 * jax.random.normal(kb, (cout,), jnp.float32)
    return w, _fold_bn(kbn, cout, b)


def _conv3x3_bn(key, cin, cout):
    kw, kb, kbn = jax.random.split(key, 3)
    w = 0.1 * jax.random.normal(kw, (3, 3, cin, cout), jnp.float32)
    b = 0.1 * jax.random.normal(kb, (cout,), jnp.float32)
    return w, _fold_bn(kbn, cout, b)


def _block_diag(a, b):
    ka, na = a.shape
    kb_, nb = b.shape
    return jnp.block([[a, jnp.zeros((ka, nb), a.dtype)],
                      [jnp.zeros((kb_, na), b.dtype), b]])


def pack_params(raw):
    """Build the bf16 / block-diagonal / 3x3-packed weights the kernels consume."""
    p = {}
    p["fh_w"] = raw["fh_w"].astype(jnp.bfloat16)
    p["fh_sb"] = raw["fh_sb"]
    p["p1_w"] = _block_diag(raw["td1_w"], raw["bu1_w"]).astype(jnp.bfloat16)
    p["p1_sb"] = jnp.concatenate([raw["td1_sb"], raw["bu1_sb"]], axis=1)
    p["p2_w"] = _block_diag(raw["td2_w"], raw["bu2_w"]).astype(jnp.bfloat16)
    p["p2_sb"] = jnp.concatenate([raw["td2_sb"], raw["bu2_sb"]], axis=1)
    w33 = raw["post_w"]                                            # (3,3,Cin,Co)
    cin, co = w33.shape[2], w33.shape[3]
    # packed[di*Cin + ci, dj*Co + co] = w33[di, dj, ci, co]
    p["post_w"] = jnp.transpose(w33, (0, 2, 1, 3)).reshape(3 * cin, 3 * co) \
                     .astype(jnp.bfloat16)
    p["post_sb"] = raw["post_sb"]
    return p


def init_params(key, in_high, in_low, out_channels, r=4):
    assert in_low == out_channels
    cb = out_channels // r
    ks = jax.random.split(key, 6)
    raw = {}
    raw["fh_w"], raw["fh_sb"] = _conv1x1_bn(ks[0], in_high, out_channels)
    raw["td1_w"], raw["td1_sb"] = _conv1x1_bn(ks[1], out_channels, cb)
    raw["td2_w"], raw["td2_sb"] = _conv1x1_bn(ks[2], cb, out_channels)
    raw["bu1_w"], raw["bu1_sb"] = _conv1x1_bn(ks[3], in_low, cb)
    raw["bu2_w"], raw["bu2_sb"] = _conv1x1_bn(ks[4], cb, out_channels)
    raw["post_w"], raw["post_sb"] = _conv3x3_bn(ks[5], out_channels, out_channels)
    return raw, pack_params(raw)


# ---------------------------------------------------------------------------
# Forward pass (public API is NCHW like the PyTorch module)
# ---------------------------------------------------------------------------
def bilocal_cha_fuse_reduce(params, xh_nchw, xl_nchw):
    B, ch, H, W = xh_nchw.shape
    cl = xl_nchw.shape[1]
    # TODO(synk): accept NHWC at the module boundary to drop these transposes.
    xh = jnp.transpose(xh_nchw, (0, 2, 3, 1)).astype(jnp.bfloat16).reshape(B * H * W, ch)
    xl = jnp.transpose(xl_nchw, (0, 2, 3, 1)).astype(jnp.bfloat16).reshape(B * H * W, cl)

    xs2 = bilocal_attention(xh, xl, params)                 # [M, Co] bf16
    co = xs2.shape[-1]
    xs = xs2.reshape(B, H, W, co)

    y = post_conv3x3(xs, params["post_w"], params["post_sb"])   # [B,H,W,Co] f32
    return jnp.transpose(y, (0, 3, 1, 2))                        # NHWC -> NCHW


# ---------------------------------------------------------------------------
# Pure-JAX f32 reference (uses the un-packed raw weights)
# ---------------------------------------------------------------------------
def reference_forward(raw, xh_nchw, xl_nchw):
    xh = jnp.transpose(xh_nchw, (0, 2, 3, 1)).astype(jnp.float32)
    xl = jnp.transpose(xl_nchw, (0, 2, 3, 1)).astype(jnp.float32)
    H, W = xh.shape[1], xh.shape[2]

    def cbr(x, w, sb):
        return jnp.matmul(x, w) * sb[0] + sb[1]

    xh_f = jax.nn.relu(cbr(xh, raw["fh_w"], raw["fh_sb"]))
    td = jax.nn.sigmoid(cbr(jax.nn.relu(cbr(xh_f, raw["td1_w"], raw["td1_sb"])),
                            raw["td2_w"], raw["td2_sb"]))
    bu = jax.nn.sigmoid(cbr(jax.nn.relu(cbr(xl, raw["bu1_w"], raw["bu1_sb"])),
                            raw["bu2_w"], raw["bu2_sb"]))
    out = 2.0 * xl * td + 2.0 * xh_f * bu
    xp = jnp.pad(out, ((0, 0), (1, 1), (1, 1), (0, 0)))
    co = raw["post_w"].shape[-1]
    acc = jnp.zeros(out.shape[:3] + (co,), jnp.float32)
    for di in range(3):
        for dj in range(3):
            acc = acc + jnp.einsum("bhwc,cd->bhwd",
                                   xp[:, di:di + H, dj:dj + W, :],
                                   raw["post_w"][di, dj])
    y = jax.nn.relu(acc * raw["post_sb"][0] + raw["post_sb"][1])
    return jnp.transpose(y, (0, 3, 1, 2))


# ---------------------------------------------------------------------------
if __name__ == "__main__":
    key = jax.random.PRNGKey(0)
    kh, kl, kp = jax.random.split(key, 3)

    B, H, W = 2, 16, 16
    CH, CL, CO, R = 32, 32, 32, 4          # module asserts in_low_channels == out_channels
    xh = jax.random.normal(kh, (B, CH, H, W), jnp.float32)   # NCHW, like PyTorch
    xl = jax.random.normal(kl, (B, CL, H, W), jnp.float32)

    raw, packed = init_params(kp, CH, CL, CO, r=R)
    fwd = jax.jit(bilocal_cha_fuse_reduce)
    out = jax.block_until_ready(fwd(packed, xh, xl))

    assert out.shape == (B, CO, H, W), out.shape
    assert bool(jnp.all(jnp.isfinite(out)))

    ref = reference_forward(raw, xh, xl)
    rel_err = float(jnp.max(jnp.abs(out - ref)) / (jnp.max(jnp.abs(ref)) + 1e-6))
    assert rel_err < 5e-2, f"mismatch vs f32 reference: rel_err={rel_err}"
    print("KERNEL_OK")
</pallas_src>

<mosaic_0001>
module attributes {stable_mosaic.version = 11 : i64} {
  func.func @_bilocal_attention_kernel(%arg0: i32, %arg1: memref<256x32xbf16, #tpu.memory_space<vmem>>, %arg2: memref<256x32xbf16, #tpu.memory_space<vmem>>, %arg3: memref<32x32xbf16, #tpu.memory_space<vmem>>, %arg4: memref<2x32xf32, #tpu.memory_space<vmem>>, %arg5: memref<64x16xbf16, #tpu.memory_space<vmem>>, %arg6: memref<2x16xf32, #tpu.memory_space<vmem>>, %arg7: memref<16x64xbf16, #tpu.memory_space<vmem>>, %arg8: memref<2x64xf32, #tpu.memory_space<vmem>>, %arg9: memref<256x32xbf16, #tpu.memory_space<vmem>>) attributes {dimension_semantics = [#tpu.dimension_semantics<parallel>], iteration_bounds = array<i64: 2>, scalar_prefetch = 0 : i64, scratch_operands = 0 : i64, tpu.core_type = #tpu.core_type<tc>, window_params = [{transform_indices = @transform_0, window_bounds = array<i64: 256, 32>}, {transform_indices = @transform_1, window_bounds = array<i64: 256, 32>}, {pipeline_mode = #tpu.pipeline_mode<synchronous>, transform_indices = @transform_2, window_bounds = array<i64: 32, 32>}, {pipeline_mode = #tpu.pipeline_mode<synchronous>, transform_indices = @transform_3, window_bounds = array<i64: 2, 32>}, {pipeline_mode = #tpu.pipeline_mode<synchronous>, transform_indices = @transform_4, window_bounds = array<i64: 64, 16>}, {pipeline_mode = #tpu.pipeline_mode<synchronous>, transform_indices = @transform_5, window_bounds = array<i64: 2, 16>}, {pipeline_mode = #tpu.pipeline_mode<synchronous>, transform_indices = @transform_6, window_bounds = array<i64: 16, 64>}, {pipeline_mode = #tpu.pipeline_mode<synchronous>, transform_indices = @transform_7, window_bounds = array<i64: 2, 64>}, {transform_indices = @transform_8, window_bounds = array<i64: 256, 32>}]} {
    %c0 = arith.constant 0 : index
    %c0_0 = arith.constant 0 : index
    %0 = vector.load %arg1[%c0, %c0_0] : memref<256x32xbf16, #tpu.memory_space<vmem>>, vector<256x32xbf16>
    %c0_1 = arith.constant 0 : index
    %c0_2 = arith.constant 0 : index
    %1 = vector.load %arg2[%c0_1, %c0_2] : memref<256x32xbf16, #tpu.memory_space<vmem>>, vector<256x32xbf16>
    %c0_3 = arith.constant 0 : index
    %c0_4 = arith.constant 0 : index
    %2 = vector.load %arg3[%c0_3, %c0_4] : memref<32x32xbf16, #tpu.memory_space<vmem>>, vector<32x32xbf16>
    %cst = arith.constant dense<0.000000e+00> : vector<256x32xf32>
    %3 = tpu.matmul %0, %2, %cst {dimension_numbers = #tpu.dot_dimension_numbers<[1], [0], [0], [1], [0, 0, 1, 1], [], []>} : vector<256x32xbf16>, vector<32x32xbf16>, vector<256x32xf32> -> vector<256x32xf32>
    %c0_5 = arith.constant 0 : index
    %c0_6 = arith.constant 0 : index
    %4 = vector.load %arg4[%c0_5, %c0_6] : memref<2x32xf32, #tpu.memory_space<vmem>>, vector<1x32xf32>
    %5 = vector.broadcast %4 : vector<1x32xf32> to vector<256x32xf32>
    %6 = arith.mulf %3, %5 : vector<256x32xf32>
    %c1 = arith.constant 1 : index
    %c0_7 = arith.constant 0 : index
    %7 = vector.load %arg4[%c1, %c0_7] : memref<2x32xf32, #tpu.memory_space<vmem>>, vector<1x32xf32>
    %8 = vector.broadcast %7 : vector<1x32xf32> to vector<256x32xf32>
    %9 = arith.addf %6, %8 : vector<256x32xf32>
    %cst_8 = arith.constant 0.000000e+00 : f32
    %10 = vector.broadcast %cst_8 : f32 to vector<256x32xf32>
    %11 = arith.maximumf %9, %10 : vector<256x32xf32>
    %12 = arith.truncf %11 : vector<256x32xf32> to vector<256x32xbf16>
    %13 = tpu.concatenate %12, %1 in 1 : vector<256x32xbf16>, vector<256x32xbf16> -> vector<256x64xbf16>
    %c0_9 = arith.constant 0 : index
    %c0_10 = arith.constant 0 : index
    %14 = vector.load %arg5[%c0_9, %c0_10] : memref<64x16xbf16, #tpu.memory_space<vmem>>, vector<64x16xbf16>
    %cst_11 = arith.constant dense<0.000000e+00> : vector<256x16xf32>
    %15 = tpu.matmul %13, %14, %cst_11 {dimension_numbers = #tpu.dot_dimension_numbers<[1], [0], [0], [1], [0, 0, 1, 1], [], []>} : vector<256x64xbf16>, vector<64x16xbf16>, vector<256x16xf32> -> vector<256x16xf32>
    %c0_12 = arith.constant 0 : index
    %c0_13 = arith.constant 0 : index
    %16 = vector.load %arg6[%c0_12, %c0_13] : memref<2x16xf32, #tpu.memory_space<vmem>>, vector<1x16xf32>
    %17 = vector.broadcast %16 : vector<1x16xf32> to vector<256x16xf32>
    %18 = arith.mulf %15, %17 : vector<256x16xf32>
    %c1_14 = arith.constant 1 : index
    %c0_15 = arith.constant 0 : index
    %19 = vector.load %arg6[%c1_14, %c0_15] : memref<2x16xf32, #tpu.memory_space<vmem>>, vector<1x16xf32>
    %20 = vector.broadcast %19 : vector<1x16xf32> to vector<256x16xf32>
    %21 = arith.addf %18, %20 : vector<256x16xf32>
    %cst_16 = arith.constant 0.000000e+00 : f32
    %22 = vector.broadcast %cst_16 : f32 to vector<256x16xf32>
    %23 = arith.maximumf %21, %22 : vector<256x16xf32>
    %24 = arith.truncf %23 : vector<256x16xf32> to vector<256x16xbf16>
    %c0_17 = arith.constant 0 : index
    %c0_18 = arith.constant 0 : index
    %25 = vector.load %arg7[%c0_17, %c0_18] : memref<16x64xbf16, #tpu.memory_space<vmem>>, vector<16x64xbf16>
    %cst_19 = arith.constant dense<0.000000e+00> : vector<256x64xf32>
    %26 = tpu.matmul %24, %25, %cst_19 {dimension_numbers = #tpu.dot_dimension_numbers<[1], [0], [0], [1], [0, 0, 1, 1], [], []>} : vector<256x16xbf16>, vector<16x64xbf16>, vector<256x64xf32> -> vector<256x64xf32>
    %c0_20 = arith.constant 0 : index
    %c0_21 = arith.constant 0 : index
    %27 = vector.load %arg8[%c0_20, %c0_21] : memref<2x64xf32, #tpu.memory_space<vmem>>, vector<1x64xf32>
    %28 = vector.broadcast %27 : vector<1x64xf32> to vector<256x64xf32>
    %29 = arith.mulf %26, %28 : vector<256x64xf32>
    %c1_22 = arith.constant 1 : index
    %c0_23 = arith.constant 0 : index
    %30 = vector.load %arg8[%c1_22, %c0_23] : memref<2x64xf32, #tpu.memory_space<vmem>>, vector<1x64xf32>
    %31 = vector.broadcast %30 : vector<1x64xf32> to vector<256x64xf32>
    %32 = arith.addf %29, %31 : vector<256x64xf32>
    %cst_24 = arith.constant 0.000000e+00 : f32
    %33 = vector.broadcast %cst_24 : f32 to vector<256x64xf32>
    %34 = arith.subf %33, %32 : vector<256x64xf32>
    %35 = math.exp %34 : vector<256x64xf32>
    %cst_25 = arith.constant 1.000000e+00 : f32
    %36 = vector.broadcast %cst_25 : f32 to vector<256x64xf32>
    %37 = arith.addf %36, %35 : vector<256x64xf32>
    %38 = tpu.reciprocal %37 {approx = true} : vector<256x64xf32> -> vector<256x64xf32>
    %39 = vector.extract_strided_slice %38 {offsets = [0, 0], sizes = [256, 32], strides = [1, 1]} : vector<256x64xf32> to vector<256x32xf32>
    %40 = vector.extract_strided_slice %38 {offsets = [0, 32], sizes = [256, 32], strides = [1, 1]} : vector<256x64xf32> to vector<256x32xf32>
    %41 = arith.extf %1 : vector<256x32xbf16> to vector<256x32xf32>
    %cst_26 = arith.constant 2.000000e+00 : f32
    %42 = vector.broadcast %cst_26 : f32 to vector<256x32xf32>
    %43 = arith.mulf %42, %41 : vector<256x32xf32>
    %44 = arith.mulf %43, %39 : vector<256x32xf32>
    %cst_27 = arith.constant 2.000000e+00 : f32
    %45 = vector.broadcast %cst_27 : f32 to vector<256x32xf32>
    %46 = arith.mulf %45, %11 : vector<256x32xf32>
    %47 = arith.mulf %46, %40 : vector<256x32xf32>
    %48 = arith.addf %44, %47 : vector<256x32xf32>
    %49 = arith.truncf %48 : vector<256x32xf32> to vector<256x32xbf16>
    %c0_28 = arith.constant 0 : index
    %c0_29 = arith.constant 0 : index
    %50 = vector.load %arg9[%c0_28, %c0_29] : memref<256x32xbf16, #tpu.memory_space<vmem>>, vector<256x32xbf16>
    tpu.vector_store %arg9[%c0_28, %c0_29], %49 {strides = array<i32>} : memref<256x32xbf16, #tpu.memory_space<vmem>>, vector<256x32xbf16>,
    return
  }
  func.func @transform_0(%arg0: i32) -> (i32, i32) {
    %c0_i32 = arith.constant 0 : i32
    %c0_i32_0 = arith.constant 0 : i32
    return %arg0, %c0_i32 : i32, i32
  }
  func.func @transform_1(%arg0: i32) -> (i32, i32) {
    %c0_i32 = arith.constant 0 : i32
    %c0_i32_0 = arith.constant 0 : i32
    return %arg0, %c0_i32 : i32, i32
  }
  func.func @transform_2(%arg0: i32) -> (i32, i32) {
    %c0_i32 = arith.constant 0 : i32
    %c0_i32_0 = arith.constant 0 : i32
    %c0_i32_1 = arith.constant 0 : i32
    return %c0_i32, %c0_i32_0 : i32, i32
  }
  func.func @transform_3(%arg0: i32) -> (i32, i32) {
    %c0_i32 = arith.constant 0 : i32
    %c0_i32_0 = arith.constant 0 : i32
    %c0_i32_1 = arith.constant 0 : i32
    return %c0_i32, %c0_i32_0 : i32, i32
  }
  func.func @transform_4(%arg0: i32) -> (i32, i32) {
    %c0_i32 = arith.constant 0 : i32
    %c0_i32_0 = arith.constant 0 : i32
    %c0_i32_1 = arith.constant 0 : i32
    return %c0_i32, %c0_i32_0 : i32, i32
  }
  func.func @transform_5(%arg0: i32) -> (i32, i32) {
    %c0_i32 = arith.constant 0 : i32
    %c0_i32_0 = arith.constant 0 : i32
    %c0_i32_1 = arith.constant 0 : i32
    return %c0_i32, %c0_i32_0 : i32, i32
  }
  func.func @transform_6(%arg0: i32) -> (i32, i32) {
    %c0_i32 = arith.constant 0 : i32
    %c0_i32_0 = arith.constant 0 : i32
    %c0_i32_1 = arith.constant 0 : i32
    return %c0_i32, %c0_i32_0 : i32, i32
  }
  func.func @transform_7(%arg0: i32) -> (i32, i32) {
    %c0_i32 = arith.constant 0 : i32
    %c0_i32_0 = arith.constant 0 : i32
    %c0_i32_1 = arith.constant 0 : i32
    return %c0_i32, %c0_i32_0 : i32, i32
  }
  func.func @transform_8(%arg0: i32) -> (i32, i32) {
    %c0_i32 = arith.constant 0 : i32
    %c0_i32_0 = arith.constant 0 : i32
    return %arg0, %c0_i32 : i32, i32
  }
}

module attributes {stable_mosaic.version = 11 : i64} {
  func.func @_post_conv3x3_kernel(%arg0: i32, %arg1: i32, %arg2: memref<1x192x32xbf16, #tpu.memory_space<vmem>>, %arg3: memref<1x192x32xbf16, #tpu.memory_space<vmem>>, %arg4: memref<1x192x32xbf16, #tpu.memory_space<vmem>>, %arg5: memref<96x96xbf16, #tpu.memory_space<vmem>>, %arg6: memref<2x32xf32, #tpu.memory_space<vmem>>, %arg7: memref<1x192x32xf32, #tpu.memory_space<vmem>>) attributes {dimension_semantics = [#tpu.dimension_semantics<parallel>, #tpu.dimension_semantics<parallel>], iteration_bounds = array<i64: 2, 2>, scalar_prefetch = 0 : i64, scratch_operands = 0 : i64, tpu.core_type = #tpu.core_type<tc>, window_params = [{transform_indices = @transform_0, window_bounds = array<i64: 1, 192, 32>}, {transform_indices = @transform_1, window_bounds = array<i64: 1, 192, 32>}, {transform_indices = @transform_2, window_bounds = array<i64: 1, 192, 32>}, {pipeline_mode = #tpu.pipeline_mode<synchronous>, transform_indices = @transform_3, window_bounds = array<i64: 96, 96>}, {pipeline_mode = #tpu.pipeline_mode<synchronous>, transform_indices = @transform_4, window_bounds = array<i64: 2, 32>}, {transform_indices = @transform_5, window_bounds = array<i64: 1, 192, 32>}]} {
    %c0 = arith.constant 0 : index
    %c0_0 = arith.constant 0 : index
    %c0_1 = arith.constant 0 : index
    %0 = vector.load %arg2[%c0, %c0_0, %c0_1] : memref<1x192x32xbf16, #tpu.memory_space<vmem>>, vector<1x192x32xbf16>
    %1 = vector.shape_cast %0 : vector<1x192x32xbf16> to vector<192x32xbf16>
    %c0_2 = arith.constant 0 : index
    %c0_3 = arith.constant 0 : index
    %c0_4 = arith.constant 0 : index
    %2 = vector.load %arg3[%c0_2, %c0_3, %c0_4] : memref<1x192x32xbf16, #tpu.memory_space<vmem>>, vector<1x192x32xbf16>
    %3 = vector.shape_cast %2 : vector<1x192x32xbf16> to vector<192x32xbf16>
    %c0_5 = arith.constant 0 : index
    %c0_6 = arith.constant 0 : index
    %c0_7 = arith.constant 0 : index
    %4 = vector.load %arg4[%c0_5, %c0_6, %c0_7] : memref<1x192x32xbf16, #tpu.memory_space<vmem>>, vector<1x192x32xbf16>
    %5 = vector.shape_cast %4 : vector<1x192x32xbf16> to vector<192x32xbf16>
    %6 = tpu.concatenate %1, %3, %5 in 1 : vector<192x32xbf16>, vector<192x32xbf16>, vector<192x32xbf16> -> vector<192x96xbf16>
    %c0_8 = arith.constant 0 : index
    %c0_9 = arith.constant 0 : index
    %7 = vector.load %arg5[%c0_8, %c0_9] : memref<96x96xbf16, #tpu.memory_space<vmem>>, vector<96x96xbf16>
    %cst = arith.constant dense<0.000000e+00> : vector<192x96xf32>
    %8 = tpu.matmul %6, %7, %cst {dimension_numbers = #tpu.dot_dimension_numbers<[1], [0], [0], [1], [0, 0, 1, 1], [], []>} : vector<192x96xbf16>, vector<96x96xbf16>, vector<192x96xf32> -> vector<192x96xf32>
    %9 = vector.extract_strided_slice %8 {offsets = [0, 0], sizes = [192, 32], strides = [1, 1]} : vector<192x96xf32> to vector<192x32xf32>
    %10 = vector.extract_strided_slice %8 {offsets = [0, 32], sizes = [192, 32], strides = [1, 1]} : vector<192x96xf32> to vector<192x32xf32>
    %11 = vector.extract_strided_slice %8 {offsets = [0, 64], sizes = [192, 32], strides = [1, 1]} : vector<192x96xf32> to vector<192x32xf32>
    %12 = vector.extract_strided_slice %10 {offsets = [1, 0], sizes = [191, 32], strides = [1, 1]} : vector<192x32xf32> to vector<191x32xf32>
    %13 = vector.extract_strided_slice %10 {offsets = [0, 0], sizes = [1, 32], strides = [1, 1]} : vector<192x32xf32> to vector<1x32xf32>
    %14 = tpu.concatenate %12, %13 in 0 : vector<191x32xf32>, vector<1x32xf32> -> vector<192x32xf32>
    %15 = arith.addf %9, %14 : vector<192x32xf32>
    %16 = vector.extract_strided_slice %11 {offsets = [2, 0], sizes = [190, 32], strides = [1, 1]} : vector<192x32xf32> to vector<190x32xf32>
    %17 = vector.extract_strided_slice %11 {offsets = [0, 0], sizes = [2, 32], strides = [1, 1]} : vector<192x32xf32> to vector<2x32xf32>
    %18 = tpu.concatenate %16, %17 in 0 : vector<190x32xf32>, vector<2x32xf32> -> vector<192x32xf32>
    %19 = arith.addf %15, %18 : vector<192x32xf32>
    %c0_10 = arith.constant 0 : index
    %c0_11 = arith.constant 0 : index
    %20 = vector.load %arg6[%c0_10, %c0_11] : memref<2x32xf32, #tpu.memory_space<vmem>>, vector<1x32xf32>
    %21 = vector.broadcast %20 : vector<1x32xf32> to vector<192x32xf32>
    %22 = arith.mulf %19, %21 : vector<192x32xf32>
    %c1 = arith.constant 1 : index
    %c0_12 = arith.constant 0 : index
    %23 = vector.load %arg6[%c1, %c0_12] : memref<2x32xf32, #tpu.memory_space<vmem>>, vector<1x32xf32>
    %24 = vector.broadcast %23 : vector<1x32xf32> to vector<192x32xf32>
    %25 = arith.addf %22, %24 : vector<192x32xf32>
    %cst_13 = arith.constant 0.000000e+00 : f32
    %26 = vector.broadcast %cst_13 : f32 to vector<192x32xf32>
    %27 = arith.maximumf %25, %26 : vector<192x32xf32>
    %c0_14 = arith.constant 0 : index
    %c0_15 = arith.constant 0 : index
    %c0_16 = arith.constant 0 : index
    %28 = vector.load %arg7[%c0_14, %c0_15, %c0_16] : memref<1x192x32xf32, #tpu.memory_space<vmem>>, vector<1x192x32xf32>
    %29 = vector.shape_cast %28 : vector<1x192x32xf32> to vector<192x32xf32>
    %30 = vector.shape_cast %27 : vector<192x32xf32> to vector<1x192x32xf32>
    tpu.vector_store %arg7[%c0_14, %c0_15, %c0_16], %30 {strides = array<i32>} : memref<1x192x32xf32, #tpu.memory_space<vmem>>, vector<1x192x32xf32>,
    return
  }
  func.func @transform_0(%arg0: i32, %arg1: i32) -> (i32, i32, i32) {
    %c0_i32 = arith.constant 0 : i32
    %c0_i32_0 = arith.constant 0 : i32
    return %arg0, %arg1, %c0_i32 : i32, i32, i32
  }
  func.func @transform_1(%arg0: i32, %arg1: i32) -> (i32, i32, i32) {
    %c0_i32 = arith.constant 0 : i32
    %c0_i32_0 = arith.constant 0 : i32
    return %arg0, %arg1, %c0_i32 : i32, i32, i32
  }
  func.func @transform_2(%arg0: i32, %arg1: i32) -> (i32, i32, i32) {
    %c0_i32 = arith.constant 0 : i32
    %c0_i32_0 = arith.constant 0 : i32
    return %arg0, %arg1, %c0_i32 : i32, i32, i32
  }
  func.func @transform_3(%arg0: i32, %arg1: i32) -> (i32, i32) {
    %c0_i32 = arith.constant 0 : i32
    %c0_i32_0 = arith.constant 0 : i32
    %c0_i32_1 = arith.constant 0 : i32
    return %c0_i32, %c0_i32_0 : i32, i32
  }
  func.func @transform_4(%arg0: i32, %arg1: i32) -> (i32, i32) {
    %c0_i32 = arith.constant 0 : i32
    %c0_i32_0 = arith.constant 0 : i32
    %c0_i32_1 = arith.constant 0 : i32
    return %c0_i32, %c0_i32_0 : i32, i32
  }
  func.func @transform_5(%arg0: i32, %arg1: i32) -> (i32, i32, i32) {
    %c0_i32 = arith.constant 0 : i32
    %c0_i32_0 = arith.constant 0 : i32
    return %arg0, %arg1, %c0_i32 : i32, i32, i32
  }
}

</mosaic_0001>

<bundles_post_ra>
// kernel: bilocal_cha_fuse_reduce.3
= control target key start
LH: loop header
LB: loop body
LE: loop exit
PB: predicated region body
PF: predicated region fallthrough
CT: control target
= control target key end

     0   :  { %s1745_s18 = smov 0   ;;  %s1747_s19 = smov 0   ;;  %s2294_s0 = inlined_call_operand.vmem [shape: bf16[2,384,32], index: 0, kind: input, shape index: {}]   ;;  %s2295_s1 = inlined_call_operand.vmem [shape: bf16[2,384,32], index: 1, kind: input, shape index: {}]   ;;  %s2296_s2 = inlined_call_operand.vmem [shape: bf16[2,384,32], index: 2, kind: input, shape index: {}]   ;;  %s2297_s3 = inlined_call_operand.vmem [shape: bf16[96,96], index: 3, kind: input, shape index: {}]   ;;  %s2298_s4 = inlined_call_operand.vmem [shape: f32[2,32], index: 4, kind: input, shape index: {}]   ;;  %s2299_s5 = inlined_call_operand.vmem [shape: f32[2,384,32], index: 5, kind: output, shape index: {}]  }
   0x1   :  { %s1749_s20 = smov 0   ;;  %s1751_s21 = smov 0  }
   0x2   :  { %s1753_s22 = smov 0  }
   0x3 LB: > { %s24_s23 = sadd.s32 1, %s1702_s20  ;;  %s27_s24 = sadd.s32 1, %s1706_s21  ;;  %s1710_s22 = sphi %s1753_s22, %s15_s22   ;;  %s1706_s21 = sphi %s1751_s21, %s2319_s21   ;;  %s1702_s20 = sphi %s1749_s20, %s2318_s20   ;;  %s1698_s19 = sphi %s1747_s19, %s2317_s19   ;;  %s1694_s18 = sphi %s1745_s18, %s2316_s18  }
   0x4   : > { %p25_p0 = scmp.ge.s32.totalorder %s24_s23, 2  ;;  %p1457_p1 = scmp.ge.s32.totalorder %s1710_s22, 1 }
   0x5   : > { %p242_p2 = scmp.lt.s32.totalorder %s1710_s22, 5 }
   0x6   : > { %s2321_s23 = smov (%p25_p0, %s24_s23), 0  ;;  %s2323_s24 = smov (!%p25_p0, %s27_s24), %s1706_s21 }
   0x7   : > { %p243_p3 = pnand %p1457_p1, %p242_p2  ;;  %p29_p4 = scmp.ge.s32.totalorder %s2323_s24, 2 }
   0x9   : > { %s2325_s24 = smov (%p29_p4, %s2323_s24), 0  ;;  %246 = sbr.rel (%p243_p3) target bundleno = 587 (0x24b), region = 40 }
  0x10   : > { %s296_s25 = smul.u32 24, %s1694_s18  ;;  %p297_p5 = scmp.lt.s32.totalorder %s1698_s19, 1  ;;  %v1654_v0 = vld [vmem:[%s2297_s3] sm:$0xff]   ;;  %v1655_v1 = vld [vmem:[%s2297_s3 + $0x8] sm:$0xff]   ;;  %v1656_v2 = vld [vmem:[%s2297_s3 + $0x10] sm:$0xff]   ;;  %vm637_vm0 = vcmask 261120  }
  0x11   : > { %1538 = vmatprep.subr.bf16.mxu0 %v1654_v0  ;;  %1574 = vmatprep.subr.bf16.mxu1 %v1654_v0  ;;  %v1659_v3 = vld [vmem:[%s2297_s3 + $0x18] sm:$0xff]   ;;  %s1712_s15 = smov 32   ;;  %v1662_v8 = vld [vmem:[%s2297_s3 + $0x20] sm:$0xff]   ;;  %v1663_v11 = vld [vmem:[%s2297_s3 + $0x28] sm:$0xff]   ;;  %s1713_s28 = smov 64   ;;  %vm674_vm1 = vcmask 523264  }
  0x12   : > { %s2327_s19 = smov (!%p297_p5, %s1698_s19), 1  ;;  %p299_p6 = scmp.lt.s32.totalorder %s296_s25, 47  ;;  %1539 = vmatpush3.bf16.msra.mxu0 %v1654_v0  ;;  %1580 = vmatpush3.bf16.msra.mxu1 %v1654_v0  ;;  %vm747_vm2 = vcmask 785408   ;;  %vm925_vm3 = vcmask 1046528   ;;  %vm1073_vm4 = vcmask 1045504  }
  0x13   : > { %s1586_s30 = smul.u32 48, %s2327_s19  ;;  %1540 = vmatprep.subr.bf16.mxu0 %v1655_v1  ;;  %1575 = vmatprep.subr.bf16.mxu1 %v1655_v1  ;;  %s1714_s7 = smov 96  }
  0x14   : > { %s2329_s25 = smov (!%p299_p6, %s296_s25), 47 }
  0x15   : > { %s1784_s8 = sadd.s32 %s1586_s30, %s2329_s25 }
  0x16   : > { %s1787_s9 = sshll.u32 %s1784_s8, 2  ;;  %1541 = vmatpush3.bf16.msra.mxu0 %v1655_v1  ;;  %1581 = vmatpush3.bf16.msra.mxu1 %v1655_v1  ;;  %s1461_s13 = sshll.u32 %s1784_s8, 3 }
  0x17   : > { %s1793_s12 = scalar_lea.vmem %s2295_s1, %s1787_s9  ;;  %1542 = vmatprep.subr.bf16.mxu0 %v1656_v2  ;;  %1576 = vmatprep.subr.bf16.mxu1 %v1656_v2  ;;  %s1808_s18 = scalar_lea.vmem %s2296_s2, %s1787_s9 }
  0x18   : > { %v1630_v4 = vld [vmem:[%s1793_s12 + $0x8] sm:$0xff]   ;;  %v1631_v5 = vld [vmem:[%s1793_s12] sm:$0xff]   ;;  %v1632_v6 = vld [vmem:[%s1793_s12 + $0x38] sm:$0xff]   ;;  %s1838_s6 = scalar_lea.vmem %s2294_s0, %s1787_s9  ;;  %s2164_s16 = scalar_lea.vmem %s2299_s5, %s1461_s13 }
  0x19   : > { %531 = vrot.lane.b32.xlu1 %v1630_v4, %s1712_s15  ;;  %529 = vrot.lane.b32.xlu0 %v1631_v5, %s1712_s15  ;;  %v1633_v7 = vld [vmem:[%s1793_s12 + $0x30] sm:$0xff]   ;;  %v1635_v10 = vld [vmem:[%s1808_s18] sm:$0xff]  }
  0x1a   : > { %1543 = vmatpush3.bf16.msra.mxu0 %v1656_v2  ;;  %1582 = vmatpush3.bf16.msra.mxu1 %v1656_v2  ;;  %v1634_v9 = vld [vmem:[%s1808_s18 + $0x30] sm:$0xff]   ;;  %v1636_v12 = vld [vmem:[%s1808_s18 + $0x38] sm:$0xff]   ;;  %v1637_v13 = vld [vmem:[%s1808_s18 + $0x8] sm:$0xff]  }
  0x1b   : > { %1544 = vmatprep.subr.bf16.mxu0 %v1659_v3  ;;  %1577 = vmatprep.subr.bf16.mxu1 %v1659_v3  ;;  %v1638_v14 = vld [vmem:[%s1793_s12 + $0x40] sm:$0xff]   ;;  %v1639_v15 = vld [vmem:[%s1793_s12 + $0x10] sm:$0xff]   ;;  %v1640_v16 = vld [vmem:[%s1793_s12 + $0x48] sm:$0xff]  }
  0x1c   : > { %v1641_v17 = vld [vmem:[%s1793_s12 + $0x18] sm:$0xff]   ;;  %v1642_v18 = vld [vmem:[%s1808_s18 + $0x40] sm:$0xff]   ;;  %v1643_v19 = vld [vmem:[%s1808_s18 + $0x10] sm:$0xff]  }
  0x1d   : > { %543 = vrot.lane.b32.xlu1 %v1632_v6, %s1712_s15  ;;  %541 = vrot.lane.b32.xlu0 %v1633_v7, %s1712_s15  ;;  %v1644_v20 = vld [vmem:[%s1808_s18 + $0x48] sm:$0xff]   ;;  %v1645_v21 = vld [vmem:[%s1808_s18 + $0x18] sm:$0xff]  }
  0x1e   : > { %1545 = vmatpush3.bf16.msra.mxu0 %v1659_v3  ;;  %1583 = vmatpush3.bf16.msra.mxu1 %v1659_v3  ;;  %v1646_v22 = vld [vmem:[%s1793_s12 + $0x50] sm:$0xff]   ;;  %v1647_v23 = vld [vmem:[%s1793_s12 + $0x20] sm:$0xff]   ;;  %v1648_v24 = vld [vmem:[%s1793_s12 + $0x58] sm:$0xff]  }
  0x1f   : > { %1546 = vmatprep.subr.bf16.mxu0 %v1662_v8  ;;  %1578 = vmatprep.subr.bf16.mxu1 %v1662_v8  ;;  %v1649_v25 = vld [vmem:[%s1793_s12 + $0x28] sm:$0xff]   ;;  %v1650_v26 = vld [vmem:[%s1808_s18 + $0x50] sm:$0xff]   ;;  %v1651_v27 = vld [vmem:[%s1808_s18 + $0x20] sm:$0xff]  }
  0x20   : > { %v1652_v28 = vld [vmem:[%s1808_s18 + $0x58] sm:$0xff]   ;;  %v1653_v29 = vld [vmem:[%s1808_s18 + $0x28] sm:$0xff]   ;;  %v1661_v33 = vld [vmem:[%s1838_s6 + $0x30] sm:$0xff]  }
  0x21   : > { %625 = vrot.lane.b32.xlu1 %v1634_v9, %s1713_s28  ;;  %613 = vrot.lane.b32.xlu0 %v1635_v10, %s1713_s28  ;;  %v1658_v34 = vld [vmem:[%s1838_s6] sm:$0xff]   ;;  %v1660_v36 = vld [vmem:[%s1838_s6 + $0x38] sm:$0xff]  }
  0x22   : > { %1547 = vmatpush3.bf16.msra.mxu0 %v1662_v8  ;;  %1584 = vmatpush3.bf16.msra.mxu1 %v1662_v8  ;;  %v1657_v39 = vld [vmem:[%s1838_s6 + $0x8] sm:$0xff]   ;;  %v1664_v52 = vld [vmem:[%s1838_s6 + $0x40] sm:$0xff]   ;;  %v1665_v54 = vld [vmem:[%s1838_s6 + $0x10] sm:$0xff]  }
  0x23   : > { %1548 = vmatprep.subr.bf16.mxu0 %v1663_v11  ;;  %1579 = vmatprep.subr.bf16.mxu1 %v1663_v11  ;;  %v1666_v57 = vld [vmem:[%s1838_s6 + $0x48] sm:$0xff]   ;;  %v1667_v60 = vld [vmem:[%s1838_s6 + $0x18] sm:$0xff]   ;;  %v1668_v8 = vld [vmem:[%s1838_s6 + $0x50] sm:$0xff]  }
  0x24   : > { %v1669_v9 = vld [vmem:[%s1838_s6 + $0x20] sm:$0xff]  }
  0x25   : > { %627 = vrot.lane.b32.xlu1 %v1636_v12, %s1713_s28  ;;  %615 = vrot.lane.b32.xlu0 %v1637_v13, %s1713_s28  ;;  %v1670_v13 = vld [vmem:[%s1838_s6 + $0x58] sm:$0xff]  }
  0x26   : > { %1549 = vmatpush3.bf16.msra.mxu0 %v1663_v11  ;;  %1585 = vmatpush3.bf16.msra.mxu1 %v1663_v11 }
  0x29   : > { %545 = vrot.lane.b32.xlu1 %v1638_v14, %s1712_s15  ;;  %533 = vrot.lane.b32.xlu0 %v1639_v15, %s1712_s15  ;;  %v1671_v15 = vld [vmem:[%s1838_s6 + $0x28] sm:$0xff]  }
  0x2d   : > { %547 = vrot.lane.b32.xlu1 %v1640_v16, %s1712_s15  ;;  %535 = vrot.lane.b32.xlu0 %v1641_v17, %s1712_s15 }
  0x31   : > { %629 = vrot.lane.b32.xlu1 %v1642_v18, %s1713_s28  ;;  %617 = vrot.lane.b32.xlu0 %v1643_v19, %s1713_s28 }
  0x35   : > { %631 = vrot.lane.b32.xlu1 %v1644_v20, %s1713_s28  ;;  %619 = vrot.lane.b32.xlu0 %v1645_v21, %s1713_s28 }
  0x39   : > { %549 = vrot.lane.b32.xlu1 %v1646_v22, %s1712_s15  ;;  %537 = vrot.lane.b32.xlu0 %v1647_v23, %s1712_s15 }
  0x3d   : > { %551 = vrot.lane.b32.xlu1 %v1648_v24, %s1712_s15  ;;  %539 = vrot.lane.b32.xlu0 %v1649_v25, %s1712_s15 }
  0x41   : > { %633 = vrot.lane.b32.xlu1 %v1650_v26, %s1713_s28  ;;  %621 = vrot.lane.b32.xlu0 %v1651_v27, %s1713_s28 }
  0x45   : > { %635 = vrot.lane.b32.xlu1 %v1652_v28, %s1713_s28  ;;  %623 = vrot.lane.b32.xlu0 %v1653_v29, %s1713_s28 }
  0x8b   : > { %v532_v30 = vpop.permute.xlu1 %531  ;;  %v530_v31 = vpop.permute.xlu0 %529 }
  0x8c   : > { %v640_v40 = vsel %vm637_vm0, %v1658_v34, %v530_v31  ;;  %v643_v46 = vsel %vm637_vm0, %v1657_v39, %v532_v30 }
  0x8f   : > { %v544_v32 = vpop.permute.xlu1 %543  ;;  %v542_v35 = vpop.permute.xlu0 %541 }
  0x90   : > { %v658_v37 = vsel %vm637_vm0, %v1661_v33, %v542_v35  ;;  %v661_v44 = vsel %vm637_vm0, %v1660_v36, %v544_v32 }
  0x93   : > { %v626_v38 = vpop.permute.xlu1 %625  ;;  %v614_v41 = vpop.permute.xlu0 %613 }
  0x94   : > { %v688_v42 = vsel %vm674_vm1, %v658_v37, %v626_v38  ;;  %v676_v43 = vsel %vm674_vm1, %v640_v40, %v614_v41 }
  0x95   : > { %1562 = vmatprep.mubr.msk.bf16.mxu1 %vm747_vm2, %v688_v42  ;;  %1550 = vmatprep.mubr.msk.bf16.mxu0 %vm747_vm2, %v676_v43 }
  0x97   : > { %v628_v45 = vpop.permute.xlu1 %627  ;;  %v616_v48 = vpop.permute.xlu0 %615 }
  0x98   : > { %v690_v47 = vsel %vm674_vm1, %v661_v44, %v628_v45  ;;  %v678_v49 = vsel %vm674_vm1, %v643_v46, %v616_v48 }
  0x99   : > { %1563 = vmatmul.mubr.msk.bf16.vlgmr.msra.gmra.mrb[0].mxu1 %vm747_vm2, %v690_v47  ;;  %1551 = vmatmul.mubr.msk.bf16.vlgmr.msra.gmra.mrb[0].mxu0 %vm747_vm2, %v678_v49 }
  0x9b   : > { %v546_v50 = vpop.permute.xlu1 %545  ;;  %v534_v51 = vpop.permute.xlu0 %533 }
  0x9c   : > { %v664_v56 = vsel %vm637_vm0, %v1664_v52, %v546_v50  ;;  %v646_v59 = vsel %vm637_vm0, %v1665_v54, %v534_v51 }
  0x9f   : > { %v548_v53 = vpop.permute.xlu1 %547  ;;  %v536_v55 = vpop.permute.xlu0 %535 }
  0xa0   : > { %v667_v63 = vsel %vm637_vm0, %v1666_v57, %v548_v53  ;;  %v649_v2 = vsel %vm637_vm0, %v1667_v60, %v536_v55 }
  0xa3   : > { %v630_v58 = vpop.permute.xlu1 %629  ;;  %v618_v62 = vpop.permute.xlu0 %617 }
  0xa4   : > { %v692_v61 = vsel %vm674_vm1, %v664_v56, %v630_v58  ;;  %v680_v0 = vsel %vm674_vm1, %v646_v59, %v618_v62 }
  0xa5   : > { %1566 = vmatprep.mubr.msk.bf16.mxu1 %vm747_vm2, %v692_v61  ;;  %1554 = vmatprep.mubr.msk.bf16.mxu0 %vm747_vm2, %v680_v0 }
  0xa7   : > { %v632_v1 = vpop.permute.xlu1 %631  ;;  %v620_v4 = vpop.permute.xlu0 %619 }
  0xa8   : > { %v694_v3 = vsel %vm674_vm1, %v667_v63, %v632_v1  ;;  %v682_v5 = vsel %vm674_vm1, %v649_v2, %v620_v4 }
  0xa9   : > { %1567 = vmatmul.mubr.msk.bf16.gmra.mrb[4].mxu1 %vm747_vm2, %v694_v3  ;;  %1555 = vmatmul.mubr.msk.bf16.gmra.mrb[4].mxu0 %vm747_vm2, %v682_v5 }
  0xab   : > { %v550_v6 = vpop.permute.xlu1 %549  ;;  %v538_v7 = vpop.permute.xlu0 %537 }
  0xac   : > { %v670_v12 = vsel %vm637_vm0, %v1668_v8, %v550_v6  ;;  %v652_v14 = vsel %vm637_vm0, %v1669_v9, %v538_v7 }
  0xaf   : > { %v552_v10 = vpop.permute.xlu1 %551  ;;  %v540_v11 = vpop.permute.xlu0 %539 }
  0xb0   : > { %v673_v19 = vsel %vm637_vm0, %v1670_v13, %v552_v10  ;;  %v655_v21 = vsel %vm637_vm0, %v1671_v15, %v540_v11 }
  0xb3   : > { %v634_v16 = vpop.permute.xlu1 %633  ;;  %v622_v18 = vpop.permute.xlu0 %621 }
  0xb4   : > { %v696_v17 = vsel %vm674_vm1, %v670_v12, %v634_v16  ;;  %v684_v20 = vsel %vm674_vm1, %v652_v14, %v622_v18 }
  0xb5   : > { %1570 = vmatprep.mubr.msk.bf16.mxu1 %vm747_vm2, %v696_v17  ;;  %1558 = vmatprep.mubr.msk.bf16.mxu0 %vm747_vm2, %v684_v20 }
  0xb7   : > { %v636_v22 = vpop.permute.xlu1 %635  ;;  %v624_v24 = vpop.permute.xlu0 %623 }
  0xb8   : > { %v698_v23 = vsel %vm674_vm1, %v673_v19, %v636_v22  ;;  %v686_v25 = vsel %vm674_vm1, %v655_v21, %v624_v24 }
  0xb9   : > { %1571 = vmatmul.mubr.msk.bf16.gmra.mrb[8].mxu1 %vm747_vm2, %v698_v23  ;;  %1559 = vmatmul.mubr.msk.bf16.gmra.mrb[8].mxu0 %vm747_vm2, %v686_v25 }
 0x16c   : > { %v1912_v26 = vpop.f32.mrb[0].mxu1  ;;  %v1914_v27 = vpop.f32.mrb[0].mxu0 }
 0x16d   : > { %v953_v28 = vrot.slane %v1912_v26, 1  ;;  %v1101_v29 = vrot.slane %v1912_v26, 2  ;;  %v1918_v30 = vpop.f32.mrb[1].mxu1  ;;  %v929_v31 = vrot.slane %v1914_v27, 1  ;;  %v1077_v32 = vrot.slane %v1914_v27, 2  ;;  %v1922_v33 = vpop.f32.mrb[1].mxu0 }
 0x16e   : > { %v949_v34 = vrot.slane %v1918_v30, 1  ;;  %v2301_v35 = vrot.slane %v1918_v30, 2  ;;  %v1926_v36 = vpop.f32.mrb[2].mxu1  ;;  %v926_v37 = vrot.slane %v1922_v33, 1  ;;  %v2300_v38 = vrot.slane %v1922_v33, 2  ;;  %v1930_v39 = vpop.f32.mrb[2].mxu0 }
 0x16f   : > { %v955_v40 = vrot.slane %v1926_v36, 1  ;;  %v1103_v41 = vrot.slane %v1926_v36, 2  ;;  %v1934_v42 = vpop.f32.mrb[3].mxu1  ;;  %v931_v43 = vrot.slane %v1930_v39, 1  ;;  %v1079_v44 = vrot.slane %v1930_v39, 2  ;;  %v1938_v45 = vpop.f32.mrb[3].mxu0 }
 0x170   : > { %v951_v46 = vrot.slane %v1934_v42, 1  ;;  %v1099_v47 = vrot.slane %v1934_v42, 2  ;;  %v927_v48 = vrot.slane %v1938_v45, 1  ;;  %v1075_v49 = vrot.slane %v1938_v45, 2 }
 0x171   : > { %v956_v50 = vsel %vm925_vm3, %v953_v28, %v955_v40  ;;  %v1104_v51 = vsel %vm1073_vm4, %v1101_v29, %v1103_v41  ;;  %v932_v52 = vsel %vm925_vm3, %v929_v31, %v931_v43  ;;  %v1080_v54 = vsel %vm1073_vm4, %v1077_v32, %v1079_v44 }
 0x172   : > { %v954_v53 = vsel %vm925_vm3, %v951_v46, %v953_v28  ;;  %v1102_v55 = vsel %vm1073_vm4, %v1099_v47, %v1101_v29  ;;  %981 = vrot.lane.b32.xlu0 %v932_v52, %s1714_s7  ;;  %v930_v56 = vsel %vm925_vm3, %v927_v48, %v929_v31  ;;  %v1078_v57 = vsel %vm1073_vm4, %v1075_v49, %v1077_v32 }
 0x173   : > { %v928_v58 = vsel %vm925_vm3, %v926_v37, %v927_v48  ;;  %v952_v59 = vsel %vm925_vm3, %v949_v34, %v951_v46  ;;  %979 = vrot.lane.b32.xlu1 %v930_v56, %s1714_s7  ;;  %v1076_v60 = vsel %vm1073_vm4, %v2300_v38, %v1075_v49  ;;  %v1966_v61 = vsel %vm1073_vm4, %v2301_v35, %v1099_v47 }
 0x176   : > { %1005 = vrot.lane.b32.xlu0 %v956_v50, %s1714_s7 }
 0x177   : > { %1003 = vrot.lane.b32.xlu1 %v954_v53, %s1714_s7 }
 0x17a   : > { %1129 = vrot.lane.b32.xlu0 %v1080_v54, %s1713_s28 }
 0x17b   : > { %1127 = vrot.lane.b32.xlu1 %v1078_v57, %s1713_s28 }
 0x17c   : > { %v1972_v62 = vpop.f32.mrb[4].mxu1  ;;  %v1974_v63 = vpop.f32.mrb[4].mxu0 }
 0x17d   : > { %v961_v0 = vrot.slane %v1972_v62, 1  ;;  %v1109_v1 = vrot.slane %v1972_v62, 2  ;;  %v1978_v2 = vpop.f32.mrb[5].mxu1  ;;  %v937_v3 = vrot.slane %v1974_v63, 1  ;;  %v1085_v4 = vrot.slane %v1974_v63, 2  ;;  %v1982_v5 = vpop.f32.mrb[5].mxu0 }
 0x17e   : > { %v957_v6 = vrot.slane %v1978_v2, 1  ;;  %v1105_v7 = vrot.slane %v1978_v2, 2  ;;  %v1986_v8 = vpop.f32.mrb[6].mxu1  ;;  %v933_v9 = vrot.slane %v1982_v5, 1  ;;  %v1081_v10 = vrot.slane %v1982_v5, 2  ;;  %1153 = vrot.lane.b32.xlu0 %v1104_v51, %s1713_s28  ;;  %v1993_v13 = vpop.f32.mrb[6].mxu0 }
 0x17f   : > { %v963_v11 = vrot.slane %v1986_v8, 1  ;;  %v1111_v12 = vrot.slane %v1986_v8, 2  ;;  %v1995_v14 = vpop.f32.mrb[7].mxu1  ;;  %v939_v15 = vrot.slane %v1993_v13, 1  ;;  %v1087_v16 = vrot.slane %v1993_v13, 2  ;;  %1151 = vrot.lane.b32.xlu1 %v1102_v55, %s1713_s28  ;;  %v2002_v19 = vpop.f32.mrb[7].mxu0 }
 0x180   : > { %v959_v17 = vrot.slane %v1995_v14, 1  ;;  %v1107_v18 = vrot.slane %v1995_v14, 2  ;;  %v935_v20 = vrot.slane %v2002_v19, 1  ;;  %v1083_v21 = vrot.slane %v2002_v19, 2 }
 0x181   : > { %v934_v22 = vsel %vm925_vm3, %v931_v43, %v933_v9  ;;  %v958_v23 = vsel %vm925_vm3, %v955_v40, %v957_v6  ;;  %v1082_v24 = vsel %vm1073_vm4, %v1079_v44, %v1081_v10  ;;  %v1106_v25 = vsel %vm1073_vm4, %v1103_v41, %v1105_v7 }
 0x182   : > { %v940_v28 = vsel %vm925_vm3, %v937_v3, %v939_v15  ;;  %v2014_v29 = vsel %vm925_vm3, %v961_v0, %v963_v11  ;;  %977 = vrot.lane.b32.xlu0 %v928_v58, %s1714_s7  ;;  %v938_v31 = vsel %vm925_vm3, %v935_v20, %v937_v3  ;;  %v2019_v32 = vsel %vm925_vm3, %v959_v17, %v961_v0 }
 0x183   : > { %v1088_v40 = vsel %vm1073_vm4, %v1085_v4, %v1087_v16  ;;  %v1086_v43 = vsel %vm1073_vm4, %v1083_v21, %v1085_v4  ;;  %983 = vrot.lane.b32.xlu1 %v934_v22, %s1714_s7  ;;  %v1112_v41 = vsel %vm1073_vm4, %v1109_v1, %v1111_v12  ;;  %v1110_v44 = vsel %vm1073_vm4, %v1107_v18, %v1109_v1 }
 0x184   : > { %v936_v46 = vsel %vm925_vm3, %v933_v9, %v935_v20  ;;  %v960_v47 = vsel %vm925_vm3, %v957_v6, %v959_v17  ;;  %v2031_v48 = vsel %vm1073_vm4, %v1081_v10, %v1083_v21  ;;  %v2034_v49 = vsel %vm1073_vm4, %v1105_v7, %v1107_v18 }
 0x186   : > { %1001 = vrot.lane.b32.xlu0 %v952_v59, %s1714_s7 }
 0x187   : > { %1007 = vrot.lane.b32.xlu1 %v958_v23, %s1714_s7 }
 0x18a   : > { %1125 = vrot.lane.b32.xlu0 %v1076_v60, %s1713_s28 }
 0x18b   : > { %1131 = vrot.lane.b32.xlu1 %v1082_v24, %s1713_s28 }
 0x18c   : > { %v2040_v50 = vpop.f32.mrb[8].mxu1  ;;  %v2042_v51 = vpop.f32.mrb[8].mxu0 }
 0x18d   : > { %2306 = vst [vmem:[#allocation2_spill] sm:$0xff] %v2040_v50  ;;  %v969_v52 = vrot.slane %v2040_v50, 1  ;;  %v1117_v53 = vrot.slane %v2040_v50, 2  ;;  %v2046_v54 = vpop.f32.mrb[9].mxu1  ;;  %v945_v55 = vrot.slane %v2042_v51, 1  ;;  %v1093_v56 = vrot.slane %v2042_v51, 2 }
 0x18e   : > { %2307 = vst [vmem:[#allocation3_spill] sm:$0xff] %v2046_v54  ;;  %v2050_v57 = vpop.f32.mrb[9].mxu0  ;;  %v965_v58 = vrot.slane %v2046_v54, 1  ;;  %v1113_v59 = vrot.slane %v2046_v54, 2  ;;  %v2054_v60 = vpop.f32.mrb[10].mxu1  ;;  %1149 = vrot.lane.b32.xlu0 %v1966_v61, %s1713_s28 }
 0x18f   : > { %2308 = vst [vmem:[#allocation4_spill] sm:$0xff] %v2054_v60  ;;  %v941_v0 = vrot.slane %v2050_v57, 1  ;;  %v1089_v1 = vrot.slane %v2050_v57, 2  ;;  %v971_v3 = vrot.slane %v2054_v60, 1  ;;  %v1119_v4 = vrot.slane %v2054_v60, 2  ;;  %v2062_v6 = vpop.f32.mrb[10].mxu0  ;;  %1155 = vrot.lane.b32.xlu1 %v1106_v25, %s1713_s28 }
 0x190   : > { %v2064_v7 = vpop.f32.mrb[11].mxu1  ;;  %v947_v9 = vrot.slane %v2062_v6, 1  ;;  %v1095_v10 = vrot.slane %v2062_v6, 2  ;;  %v2069_v17 = vpop.f32.mrb[11].mxu0  ;;  %v966_v23 = vsel %vm925_vm3, %v963_v11, %v965_v58  ;;  %v1114_v25 = vsel %vm1073_vm4, %v1111_v12, %v1113_v59 }
 0x191   : > { %2309 = vst [vmem:[#allocation5_spill] sm:$0xff] %v2064_v7  ;;  %v967_v18 = vrot.slane %v2064_v7, 1  ;;  %v1115_v20 = vrot.slane %v2064_v7, 2  ;;  %v943_v21 = vrot.slane %v2069_v17, 1  ;;  %v1091_v61 = vrot.slane %v2069_v17, 2 }
 0x192   : > { %v942_v22 = vsel %vm925_vm3, %v939_v15, %v941_v0  ;;  %v1090_v24 = vsel %vm1073_vm4, %v1087_v16, %v1089_v1  ;;  %v948_v38 = vsel %vm925_vm3, %v945_v55, %v947_v9  ;;  %v950_v35 = vsel %vm925_vm3, %v947_v9, %v949_v34  ;;  %989 = vrot.lane.b32.xlu0 %v940_v28, %s1714_s7 }
 0x193   : > { %v972_v15 = vsel %vm925_vm3, %v969_v52, %v971_v3  ;;  %v975_v11 = vsel %vm925_vm3, %v971_v3, %v926_v37  ;;  %v1096_v16 = vsel %vm1073_vm4, %v1093_v56, %v1095_v10  ;;  %v2310_v60 = vrot.slane %v1918_v30, 2  ;;  %987 = vrot.lane.b32.xlu1 %v938_v31, %s1714_s7 }
 0x194   : > { %v944_v50 = vsel %vm925_vm3, %v941_v0, %v943_v21  ;;  %v946_v34 = vsel %vm925_vm3, %v943_v21, %v945_v55  ;;  %v968_v28 = vsel %vm925_vm3, %v965_v58, %v967_v18  ;;  %v970_v9 = vsel %vm925_vm3, %v967_v18, %v969_v52 }
 0x195   : > { %v1098_v12 = vsel %vm1073_vm4, %v1095_v10, %v2310_v60  ;;  %v1092_v7 = vsel %vm1073_vm4, %v1089_v1, %v1091_v61  ;;  %v1094_v37 = vsel %vm1073_vm4, %v1091_v61, %v1093_v56  ;;  %v1116_v3 = vsel %vm1073_vm4, %v1113_v59, %v1115_v20 }
 0x196   : > { %v1118_v54 = vsel %vm1073_vm4, %v1115_v20, %v1117_v53  ;;  %v1120_v60 = vsel %vm1073_vm4, %v1117_v53, %v1119_v4  ;;  %v2311_v31 = vrot.slane %v1922_v33, 2  ;;  %1013 = vrot.lane.b32.xlu0 %v2014_v29, %s1714_s7 }
 0x197   : > { %1011 = vrot.lane.b32.xlu1 %v2019_v32, %s1714_s7 }
 0x198   : > { %v1123_v0 = vsel %vm1073_vm4, %v1119_v4, %v2311_v31 }
 0x19a   : > { %1137 = vrot.lane.b32.xlu0 %v1088_v40, %s1713_s28 }
 0x19b   : > { %1135 = vrot.lane.b32.xlu1 %v1086_v43, %s1713_s28 }
 0x19e   : > { %1161 = vrot.lane.b32.xlu0 %v1112_v41, %s1713_s28  ;;  %v2148_v41 = vld [vmem:[%s2298_s4] ss:$0 sm:$0xff] }
 0x19f   : > { %1159 = vrot.lane.b32.xlu1 %v1110_v44, %s1713_s28 }
 0x1a2   : > { %985 = vrot.lane.b32.xlu0 %v936_v46, %s1714_s7 }
 0x1a3   : > { %991 = vrot.lane.b32.xlu1 %v942_v22, %s1714_s7 }
 0x1a6   : > { %1009 = vrot.lane.b32.xlu0 %v960_v47, %s1714_s7 }
 0x1a7   : > { %1015 = vrot.lane.b32.xlu1 %v966_v23, %s1714_s7 }
 0x1aa   : > { %1133 = vrot.lane.b32.xlu0 %v2031_v48, %s1713_s28  ;;  %v2153_v48 = vld [vmem:[%s2298_s4 + $0x1] ss:$0 sm:$0xff] }
 0x1ab   : > { %1139 = vrot.lane.b32.xlu1 %v1090_v24, %s1713_s28 }
 0x1ae   : > { %1157 = vrot.lane.b32.xlu0 %v2034_v49, %s1713_s28 }
 0x1af   : > { %1163 = vrot.lane.b32.xlu1 %v1114_v25, %s1713_s28 }
 0x1b2   : > { %997 = vrot.lane.b32.xlu0 %v948_v38, %s1714_s7 }
 0x1b3   : > { %999 = vrot.lane.b32.xlu1 %v950_v35, %s1714_s7 }
 0x1b6   : > { %1021 = vrot.lane.b32.xlu0 %v972_v15, %s1714_s7 }
 0x1b7   : > { %1023 = vrot.lane.b32.xlu1 %v975_v11, %s1714_s7 }
 0x1ba   : > { %1145 = vrot.lane.b32.xlu0 %v1096_v16, %s1713_s28 }
 0x1bb   : > { %1147 = vrot.lane.b32.xlu1 %v1098_v12, %s1713_s28 }
 0x1be   : > { %993 = vrot.lane.b32.xlu0 %v944_v50, %s1714_s7 }
 0x1bf   : > { %995 = vrot.lane.b32.xlu1 %v946_v34, %s1714_s7 }
 0x1c2   : > { %1017 = vrot.lane.b32.xlu0 %v968_v28, %s1714_s7 }
 0x1c3   : > { %1019 = vrot.lane.b32.xlu1 %v970_v9, %s1714_s7 }
 0x1c6   : > { %1141 = vrot.lane.b32.xlu0 %v1092_v7, %s1713_s28 }
 0x1c7   : > { %1143 = vrot.lane.b32.xlu1 %v1094_v37, %s1713_s28 }
 0x1ca   : > { %1165 = vrot.lane.b32.xlu0 %v1116_v3, %s1713_s28 }
 0x1cb   : > { %1167 = vrot.lane.b32.xlu1 %v1118_v54, %s1713_s28 }
 0x1ce   : > { %1169 = vrot.lane.b32.xlu0 %v1120_v60, %s1713_s28 }
 0x1cf   : > { %1171 = vrot.lane.b32.xlu1 %v1123_v0, %s1713_s28 }
 0x1e4   : > { %v982_v35 = vpop.permute.xlu0 %981 }
 0x1e5   : > { %v980_v38 = vpop.permute.xlu1 %979  ;;  %v1051_v40 = vadd.f32 %v1914_v27, %v982_v35 }
 0x1e6   : > { %v1050_v43 = vadd.f32 %v980_v38, %v1938_v45 }
 0x1e8   : > { %v1006_v29 = vpop.permute.xlu0 %1005 }
 0x1e9   : > { %v1004_v32 = vpop.permute.xlu1 %1003  ;;  %v1063_v50 = vadd.f32 %v1912_v26, %v1006_v29 }
 0x1ea   : > { %v1062_v45 = vadd.f32 %v1004_v32, %v1934_v42 }
 0x1ec   : > { %v1130_v44 = vpop.permute.xlu0 %1129 }
 0x1ed   : > { %v1199_v46 = vadd.f32 %v1130_v44, %v1051_v40  ;;  %v1128_v47 = vpop.permute.xlu1 %1127 }
 0x1ee   : > { %v1198_v49 = vadd.f32 %v1128_v47, %v1050_v43 }
 0x1ef   : > { %v1228_v27 = vmul.f32 %v2148_v41, %v1199_v46 }
 0x1f0   : > { %v1227_v52 = vmul.f32 %v2148_v41, %v1198_v49  ;;  %v1154_v53 = vpop.permute.xlu0 %1153 }
 0x1f1   : > { %v1257_v54 = vadd.f32 %v2153_v48, %v1228_v27  ;;  %v1211_v55 = vadd.f32 %v1154_v53, %v1063_v50  ;;  %v1152_v56 = vpop.permute.xlu1 %1151 }
 0x1f2   : > { %v1256_v26 = vadd.f32 %v2153_v48, %v1227_v52  ;;  %v1210_v58 = vadd.f32 %v1152_v56, %v1062_v45 }
 0x1f3   : > { %v1281_v42 = vmax.f32 %v1257_v54, 0.0  ;;  %v1240_v59 = vmul.f32 %v2148_v41, %v1211_v55 }
 0x1f4   : > { %v1280_v1 = vmax.f32 %v1256_v26, 0.0  ;;  %v1239_v4 = vmul.f32 %v2148_v41, %v1210_v58  ;;  %v978_v7 = vpop.permute.xlu0 %977 }
 0x1f5   : > { %1305 = vst.msk [vmem:[%s2164_s16 + $0x10] sm:$0xff] %vm637_vm0, %v1281_v42  ;;  %v1269_v10 = vadd.f32 %v2153_v48, %v1240_v59  ;;  %v984_v18 = vpop.permute.xlu1 %983  ;;  %v1049_v24 = vadd.f32 %v978_v7, %v1922_v33 }
 0x1f6   : > { %1304 = vst.msk [vmem:[%s2164_s16 + $0x8] sm:$0xff] %vm637_vm0, %v1280_v1  ;;  %v1268_v20 = vadd.f32 %v2153_v48, %v1239_v4  ;;  %v1052_v25 = vadd.f32 %v1930_v39, %v984_v18 }
 0x1f7   : > { %v1293_v21 = vmax.f32 %v1269_v10, 0.0 }
 0x1f8   : > { %v1292_v61 = vmax.f32 %v1268_v20, 0.0  ;;  %v1002_v22 = vpop.permute.xlu0 %1001 }
 0x1f9   : > { %1317 = vst.msk [vmem:[%s2164_s16 + $0x70] sm:$0xff] %vm637_vm0, %v1293_v21  ;;  %v1008_v23 = vpop.permute.xlu1 %1007  ;;  %v1061_v34 = vadd.f32 %v1002_v22, %v1918_v30 }
 0x1fa   : > { %1316 = vst.msk [vmem:[%s2164_s16 + $0x68] sm:$0xff] %vm637_vm0, %v1292_v61  ;;  %v1064_v9 = vadd.f32 %v1926_v36, %v1008_v23 }
 0x1fc   : > { %v1126_v15 = vpop.permute.xlu0 %1125 }
 0x1fd   : > { %v1197_v11 = vadd.f32 %v1126_v15, %v1049_v24  ;;  %v1132_v16 = vpop.permute.xlu1 %1131 }
 0x1fe   : > { %v1200_v12 = vadd.f32 %v1132_v16, %v1052_v25 }
 0x1ff   : > { %v1226_v28 = vmul.f32 %v2148_v41, %v1197_v11 }
 0x200   : > { %v1229_v37 = vmul.f32 %v2148_v41, %v1200_v12  ;;  %v1150_v3 = vpop.permute.xlu0 %1149 }
 0x201   : > { %v1255_v60 = vadd.f32 %v2153_v48, %v1226_v28  ;;  %v1209_v33 = vadd.f32 %v1150_v3, %v1061_v34  ;;  %v1156_v31 = vpop.permute.xlu1 %1155 }
 0x202   : > { %v1258_v39 = vadd.f32 %v2153_v48, %v1229_v37  ;;  %v1212_v0 = vadd.f32 %v1156_v31, %v1064_v9 }
 0x203   : > { %v1279_v35 = vmax.f32 %v1255_v60, 0.0  ;;  %v1238_v30 = vmul.f32 %v2148_v41, %v1209_v33 }
 0x204   : > { %v1282_v38 = vmax.f32 %v1258_v39, 0.0  ;;  %v1241_v29 = vmul.f32 %v2148_v41, %v1212_v0  ;;  %v990_v36 = vpop.permute.xlu0 %989 }
 0x205   : > { %1303 = vst.msk [vmem:[%s2164_s16] sm:$0xff] %vm637_vm0, %v1279_v35  ;;  %v1267_v32 = vadd.f32 %v2153_v48, %v1238_v30  ;;  %v988_v40 = vpop.permute.xlu1 %987  ;;  %v1055_v50 = vadd.f32 %v1974_v63, %v990_v36 }
 0x206   : > { %1306 = vst.msk [vmem:[%s2164_s16 + $0x18] sm:$0xff] %vm637_vm0, %v1282_v38  ;;  %v1270_v43 = vadd.f32 %v2153_v48, %v1241_v29  ;;  %v1054_v27 = vadd.f32 %v988_v40, %v2002_v19 }
 0x207   : > { %v1291_v44 = vmax.f32 %v1267_v32, 0.0 }
 0x208   : > { %v1294_v46 = vmax.f32 %v1270_v43, 0.0  ;;  %v1014_v47 = vpop.permute.xlu0 %1013 }
 0x209   : > { %1315 = vst.msk [vmem:[%s2164_s16 + $0x60] sm:$0xff] %vm637_vm0, %v1291_v44  ;;  %v1012_v49 = vpop.permute.xlu1 %1011  ;;  %v1067_v55 = vadd.f32 %v1972_v62, %v1014_v47 }
 0x20a   : > { %1318 = vst.msk [vmem:[%s2164_s16 + $0x78] sm:$0xff] %vm637_vm0, %v1294_v46  ;;  %v1066_v26 = vadd.f32 %v1012_v49, %v1995_v14 }
 0x20c   : > { %v1138_v45 = vpop.permute.xlu0 %1137 }
 0x20d   : > { %v1203_v52 = vadd.f32 %v1138_v45, %v1055_v50  ;;  %v1136_v53 = vpop.permute.xlu1 %1135 }
 0x20e   : > { %v1202_v54 = vadd.f32 %v1136_v53, %v1054_v27 }
 0x20f   : > { %v1232_v56 = vmul.f32 %v2148_v41, %v1203_v52 }
 0x210   : > { %v1231_v58 = vmul.f32 %v2148_v41, %v1202_v54  ;;  %v1162_v42 = vpop.permute.xlu0 %1161 }
 0x211   : > { %v1261_v59 = vadd.f32 %v2153_v48, %v1232_v56  ;;  %v1215_v63 = vadd.f32 %v1162_v42, %v1067_v55  ;;  %v1160_v1 = vpop.permute.xlu1 %1159 }
 0x212   : > { %v1260_v19 = vadd.f32 %v2153_v48, %v1231_v58  ;;  %v1214_v4 = vadd.f32 %v1160_v1, %v1066_v26 }
 0x213   : > { %v1285_v7 = vmax.f32 %v1261_v59, 0.0  ;;  %v1244_v62 = vmul.f32 %v2148_v41, %v1215_v63 }
 0x214   : > { %v1284_v10 = vmax.f32 %v1260_v19, 0.0  ;;  %v1243_v18 = vmul.f32 %v2148_v41, %v1214_v4  ;;  %v986_v14 = vpop.permute.xlu0 %985 }
 0x215   : > { %1309 = vst.msk [vmem:[%s2164_s16 + $0x30] sm:$0xff] %vm637_vm0, %v1285_v7  ;;  %v1273_v20 = vadd.f32 %v2153_v48, %v1244_v62  ;;  %v992_v21 = vpop.permute.xlu1 %991  ;;  %v1053_v15 = vadd.f32 %v986_v14, %v1982_v5 }
 0x216   : > { %1308 = vst.msk [vmem:[%s2164_s16 + $0x28] sm:$0xff] %vm637_vm0, %v1284_v10  ;;  %v1272_v61 = vadd.f32 %v2153_v48, %v1243_v18  ;;  %v1056_v11 = vadd.f32 %v1993_v13, %v992_v21  ;;  %v2312_v10 = vld [vmem:[#allocation3_spill] sm:$0xff] }
 0x217   : > { %v1297_v22 = vmax.f32 %v1273_v20, 0.0  ;;  %v2313_v20 = vld [vmem:[#allocation5_spill] sm:$0xff] }
 0x218   : > { %v1296_v23 = vmax.f32 %v1272_v61, 0.0  ;;  %v1010_v24 = vpop.permute.xlu0 %1009 }
 0x219   : > { %1321 = vst.msk [vmem:[%s2164_s16 + $0x90] sm:$0xff] %vm637_vm0, %v1297_v22  ;;  %v1016_v25 = vpop.permute.xlu1 %1015  ;;  %v1065_v9 = vadd.f32 %v1010_v24, %v1978_v2 }
 0x21a   : > { %1320 = vst.msk [vmem:[%s2164_s16 + $0x88] sm:$0xff] %vm637_vm0, %v1296_v23  ;;  %v1068_v3 = vadd.f32 %v1986_v8, %v1016_v25 }
 0x21c   : > { %v1134_v16 = vpop.permute.xlu0 %1133 }
 0x21d   : > { %v1201_v12 = vadd.f32 %v1134_v16, %v1053_v15  ;;  %v1140_v34 = vpop.permute.xlu1 %1139  ;;  %v2314_v15 = vld [vmem:[#allocation2_spill] sm:$0xff] }
 0x21e   : > { %v1204_v28 = vadd.f32 %v1140_v34, %v1056_v11  ;;  %v2315_v34 = vld [vmem:[#allocation4_spill] sm:$0xff] }
 0x21f   : > { %v1230_v37 = vmul.f32 %v2148_v41, %v1201_v12 }
 0x220   : > { %v1233_v60 = vmul.f32 %v2148_v41, %v1204_v28  ;;  %v1158_v33 = vpop.permute.xlu0 %1157 }
 0x221   : > { %v1259_v31 = vadd.f32 %v2153_v48, %v1230_v37  ;;  %v1213_v5 = vadd.f32 %v1158_v33, %v1065_v9  ;;  %v1164_v39 = vpop.permute.xlu1 %1163 }
 0x222   : > { %v1262_v13 = vadd.f32 %v2153_v48, %v1233_v60  ;;  %v1216_v0 = vadd.f32 %v1164_v39, %v1068_v3 }
 0x223   : > { %v1283_v35 = vmax.f32 %v1259_v31, 0.0  ;;  %v1242_v2 = vmul.f32 %v2148_v41, %v1213_v5 }
 0x224   : > { %v1286_v30 = vmax.f32 %v1262_v13, 0.0  ;;  %v1245_v38 = vmul.f32 %v2148_v41, %v1216_v0  ;;  %v998_v8 = vpop.permute.xlu0 %997 }
 0x225   : > { %1307 = vst.msk [vmem:[%s2164_s16 + $0x20] sm:$0xff] %vm637_vm0, %v1283_v35  ;;  %v1271_v29 = vadd.f32 %v2153_v48, %v1242_v2  ;;  %v1000_v36 = vpop.permute.xlu1 %999  ;;  %v1059_v47 = vadd.f32 %v2042_v51, %v998_v8 }
 0x226   : > { %1310 = vst.msk [vmem:[%s2164_s16 + $0x38] sm:$0xff] %vm637_vm0, %v1286_v30  ;;  %v1274_v32 = vadd.f32 %v2153_v48, %v1245_v38  ;;  %v1060_v49 = vadd.f32 %v2062_v6, %v1000_v36 }
 0x227   : > { %v1295_v40 = vmax.f32 %v1271_v29, 0.0 }
 0x228   : > { %v1298_v43 = vmax.f32 %v1274_v32, 0.0  ;;  %v1022_v44 = vpop.permute.xlu0 %1021 }
 0x229   : > { %1319 = vst.msk [vmem:[%s2164_s16 + $0x80] sm:$0xff] %vm637_vm0, %v1295_v40  ;;  %v1024_v46 = vpop.permute.xlu1 %1023  ;;  %v1071_v11 = vadd.f32 %v2314_v15, %v1022_v44 }
 0x22a   : > { %1322 = vst.msk [vmem:[%s2164_s16 + $0x98] sm:$0xff] %vm637_vm0, %v1298_v43  ;;  %v1072_v28 = vadd.f32 %v2315_v34, %v1024_v46 }
 0x22c   : > { %v1146_v50 = vpop.permute.xlu0 %1145 }
 0x22d   : > { %v1207_v27 = vadd.f32 %v1146_v50, %v1059_v47  ;;  %v1148_v45 = vpop.permute.xlu1 %1147 }
 0x22e   : > { %v1208_v52 = vadd.f32 %v1148_v45, %v1060_v49 }
 0x22f   : > { %v1236_v53 = vmul.f32 %v2148_v41, %v1207_v27 }
 0x230   : > { %v1237_v54 = vmul.f32 %v2148_v41, %v1208_v52  ;;  %v994_v55 = vpop.permute.xlu0 %993 }
 0x231   : > { %v1265_v56 = vadd.f32 %v2153_v48, %v1236_v53  ;;  %v996_v26 = vpop.permute.xlu1 %995  ;;  %v1057_v63 = vadd.f32 %v994_v55, %v2050_v57 }
 0x232   : > { %v1266_v58 = vadd.f32 %v2153_v48, %v1237_v54  ;;  %v1058_v1 = vadd.f32 %v996_v26, %v2069_v17 }
 0x233   : > { %v1289_v42 = vmax.f32 %v1265_v56, 0.0 }
 0x234   : > { %v1290_v59 = vmax.f32 %v1266_v58, 0.0  ;;  %v1018_v51 = vpop.permute.xlu0 %1017 }
 0x235   : > { %1313 = vst.msk [vmem:[%s2164_s16 + $0x50] sm:$0xff] %vm637_vm0, %v1289_v42  ;;  %v1020_v6 = vpop.permute.xlu1 %1019  ;;  %v1069_v18 = vadd.f32 %v1018_v51, %v2312_v10 }
 0x236   : > { %1314 = vst.msk [vmem:[%s2164_s16 + $0x58] sm:$0xff] %vm637_vm0, %v1290_v59  ;;  %v1070_v21 = vadd.f32 %v1020_v6, %v2313_v20 }
 0x238   : > { %v1142_v19 = vpop.permute.xlu0 %1141 }
 0x239   : > { %v1205_v4 = vadd.f32 %v1142_v19, %v1057_v63  ;;  %v1144_v7 = vpop.permute.xlu1 %1143 }
 0x23a   : > { %v1206_v62 = vadd.f32 %v1144_v7, %v1058_v1 }
 0x23b   : > { %v1234_v14 = vmul.f32 %v2148_v41, %v1205_v4 }
 0x23c   : > { %v1235_v61 = vmul.f32 %v2148_v41, %v1206_v62  ;;  %v1166_v22 = vpop.permute.xlu0 %1165 }
 0x23d   : > { %v1263_v23 = vadd.f32 %v2153_v48, %v1234_v14  ;;  %v1217_v57 = vadd.f32 %v1166_v22, %v1069_v18  ;;  %v1168_v24 = vpop.permute.xlu1 %1167 }
 0x23e   : > { %v1264_v17 = vadd.f32 %v2153_v48, %v1235_v61  ;;  %v1218_v25 = vadd.f32 %v1168_v24, %v1070_v21 }
 0x23f   : > { %v1287_v16 = vmax.f32 %v1263_v23, 0.0  ;;  %v1246_v12 = vmul.f32 %v2148_v41, %v1217_v57 }
 0x240   : > { %v1288_v9 = vmax.f32 %v1264_v17, 0.0  ;;  %v1247_v37 = vmul.f32 %v2148_v41, %v1218_v25  ;;  %v1170_v3 = vpop.permute.xlu0 %1169 }
 0x241   : > { %1311 = vst.msk [vmem:[%s2164_s16 + $0x40] sm:$0xff] %vm637_vm0, %v1287_v16  ;;  %v1275_v60 = vadd.f32 %v2153_v48, %v1246_v12  ;;  %v1219_v33 = vadd.f32 %v1170_v3, %v1071_v11  ;;  %v1172_v31 = vpop.permute.xlu1 %1171 }
 0x242   : > { %1312 = vst.msk [vmem:[%s2164_s16 + $0x48] sm:$0xff] %vm637_vm0, %v1288_v9  ;;  %v1276_v5 = vadd.f32 %v2153_v48, %v1247_v37  ;;  %v1220_v39 = vadd.f32 %v1172_v31, %v1072_v28 }
 0x243   : > { %v1299_v13 = vmax.f32 %v1275_v60, 0.0  ;;  %v1248_v0 = vmul.f32 %v2148_v41, %v1219_v33 }
 0x244   : > { %v1300_v35 = vmax.f32 %v1276_v5, 0.0  ;;  %v1249_v2 = vmul.f32 %v2148_v41, %v1220_v39 }
 0x245   : > { %1323 = vst.msk [vmem:[%s2164_s16 + $0xa0] sm:$0xff] %vm637_vm0, %v1299_v13  ;;  %v1277_v30 = vadd.f32 %v2153_v48, %v1248_v0 }
 0x246   : > { %1324 = vst.msk [vmem:[%s2164_s16 + $0xa8] sm:$0xff] %vm637_vm0, %v1300_v35  ;;  %v1278_v38 = vadd.f32 %v2153_v48, %v1249_v2 }
 0x247   : > { %v1301_v8 = vmax.f32 %v1277_v30, 0.0 }
 0x248   : > { %v1302_v29 = vmax.f32 %v1278_v38, 0.0 }
 0x249   : > { %1325 = vst.msk [vmem:[%s2164_s16 + $0xb0] sm:$0xff] %vm637_vm0, %v1301_v8 }
 0x24a   : > { %1326 = vst.msk [vmem:[%s2164_s16 + $0xb8] sm:$0xff] %vm637_vm0, %v1302_v29 }
 0x24b PF: > { %s15_s22 = sadd.s32 1, %s1710_s22   ;;  %s2316_s18 = smov %s1702_s20 }
 0x24c   : > { %p12_p7 = scmp.ge.s32.totalorder %s15_s22, 6   ;;  %s2317_s19 = smov %s1706_s21 }
 0x24d   : > { %s2318_s20 = smov %s2321_s23  ;;  %s2319_s21 = smov %s2325_s24 }
 0x24e   :  { %14 = sbr.rel (!%p12_p7) target bundleno = 3 (0x3), region = 76 }

// kernel: bilocal_cha_fuse_reduce.2
= control target key start
LH: loop header
LB: loop body
LE: loop exit
PB: predicated region body
PF: predicated region fallthrough
CT: control target
= control target key end

     0   :  { %s2926_s27 = smov 0   ;;  %s3871_s0 = inlined_call_operand.vmem [shape: bf16[512,32], index: 0, kind: input, shape index: {}]   ;;  %s3872_s1 = inlined_call_operand.vmem [shape: bf16[512,32], index: 1, kind: input, shape index: {}]   ;;  %s3873_s2 = inlined_call_operand.vmem [shape: bf16[32,32], index: 2, kind: input, shape index: {}]   ;;  %s3874_s3 = inlined_call_operand.vmem [shape: f32[2,32], index: 3, kind: input, shape index: {}]   ;;  %s3875_s4 = inlined_call_operand.vmem [shape: bf16[64,16], index: 4, kind: input, shape index: {}]   ;;  %s3876_s5 = inlined_call_operand.vmem [shape: f32[2,16], index: 5, kind: input, shape index: {}]   ;;  %s3877_s6 = inlined_call_operand.vmem [shape: bf16[16,64], index: 6, kind: input, shape index: {}]   ;;  %s3878_s7 = inlined_call_operand.vmem [shape: f32[2,64], index: 7, kind: input, shape index: {}]   ;;  %s3879_s8 = inlined_call_operand.vmem [shape: bf16[512,32], index: 8, kind: output, shape index: {}]  }
   0x1 LB: > { %s2333_s28 = sadd.s32 4294967295, %s2877_s27   ;;  %p2337_p0 = scmp.ge.s32.totalorder %s2877_s27, 1  ;;  %s2877_s27 = sphi %s2926_s27, %s18_s27  }
   0x2   : > { %p274_p1 = scmp.lt.s32.totalorder %s2877_s27, 3 }
   0x4   : > { %p275_p2 = pnand %p2337_p0, %p274_p1 }
   0x6   : > { %278 = sbr.rel (%p275_p2) target bundleno = 905 (0x389), region = 52 }
   0xd   : > { %v2682_v0 = vld [vmem:[%s3873_s2] sm:$0xff]   ;;  %s2338_s9 = sshll.u32 %s2333_s28, 5  ;;  %v2683_v1 = vld [vmem:[%s3873_s2 + $0x8] sm:$0xff]   ;;  %vm492_vm0 = vcmask 261120   ;;  %v2718_v12 = vld [vmem:[%s3875_s4 + $0x10] sm:$0xff]   ;;  %s2879_s25 = smov 32  }
   0xe   : > { %p314_p3 = scmp.lt.s32.totalorder %s2338_s9, 63  ;;  %2558 = vmatprep.subr.bf16.mxu0 %v2682_v0  ;;  %2668 = vmatprep.subr.bf16.mxu1 %v2682_v0  ;;  %v2716_v2 = vld [vmem:[%s3875_s4] sm:$0xff]   ;;  %v2717_v9 = vld [vmem:[%s3875_s4 + $0x8] sm:$0xff]   ;;  %v2719_v37 = vld [vmem:[%s3875_s4 + $0x18] sm:$0xff]   ;;  %vm1016_vm1 = vcmask 523264   ;;  %vm1340_vm2 = vcmask 130048  }
   0xf   : > { %2559 = vmatpush3.bf16.msra.mxu0 %v2682_v0  ;;  %2670 = vmatpush3.bf16.msra.mxu1 %v2682_v0  ;;  %v2720_v38 = vld [vmem:[%s3877_s6] sm:$0xff]   ;;  %s2880_s22 = smov 96   ;;  %vm2232_vm3 = vcmask 257024  }
  0x10   : > { %s3995_s9 = smov (!%p314_p3, %s2338_s9), 63  ;;  %2560 = vmatprep.subr.bf16.mxu0 %v2683_v1  ;;  %2669 = vmatprep.subr.bf16.mxu1 %v2683_v1  ;;  %v3066_v39 = vld [vmem:[%s3874_s3] ss:$0 sm:$0xff]  ;;  %v3071_v41 = vld [vmem:[%s3874_s3 + $0x1] ss:$0 sm:$0xff] }
  0x11   : > { %s2943_s14 = sshll.u32 %s3995_s9, 2 }
  0x12   : > { %s2949_s17 = scalar_lea.vmem %s3871_s0, %s2943_s14  ;;  %s2978_s24 = scalar_lea.vmem %s3872_s1, %s2943_s14 }
  0x13   : > { %2561 = vmatpush3.bf16.msra.mxu0 %v2683_v1  ;;  %v2684_v3 = vld [vmem:[%s2949_s17] sm:$0xff]   ;;  %2671 = vmatpush3.bf16.msra.mxu1 %v2683_v1  ;;  %v2685_v4 = vld [vmem:[%s2949_s17 + $0x8] sm:$0xff]   ;;  %v2686_v5 = vld [vmem:[%s2949_s17 + $0x10] sm:$0xff]  }
  0x14   : > { %2594 = vmatprep.subr.bf16.mxu1 %v2716_v2  ;;  %2562 = vmatprep.mubr.msk.bf16.mxu0 %vm492_vm0, %v2684_v3  ;;  %v2687_v6 = vld [vmem:[%s2949_s17 + $0x18] sm:$0xff]   ;;  %v2688_v7 = vld [vmem:[%s2949_s17 + $0x20] sm:$0xff]   ;;  %v2693_v10 = vld [vmem:[%s2949_s17 + $0x48] sm:$0xff]  }
  0x15   : > { %v2692_v8 = vld [vmem:[%s2949_s17 + $0x40] sm:$0xff]   ;;  %v2694_v11 = vld [vmem:[%s2949_s17 + $0x50] sm:$0xff]   ;;  %v2689_v13 = vld [vmem:[%s2949_s17 + $0x28] sm:$0xff]   ;;  %2634 = vmatprep.subr.bf16.mxu0 %v2720_v38 }
  0x16   : > { %2563 = vmatmul.mubr.msk.bf16.vlgmr.msra.gmra.mrb[0].mxu0 %vm492_vm0, %v2685_v4  ;;  %2578 = vmatprep.mubr.msk.bf16.mxu1 %vm492_vm0, %v2692_v8  ;;  %v2690_v14 = vld [vmem:[%s2949_s17 + $0x30] sm:$0xff]   ;;  %v2695_v15 = vld [vmem:[%s2949_s17 + $0x58] sm:$0xff]   ;;  %v2696_v16 = vld [vmem:[%s2949_s17 + $0x60] sm:$0xff]  }
  0x17   : > { %2566 = vmatprep.mubr.msk.bf16.mxu0 %vm492_vm0, %v2686_v5  ;;  %2579 = vmatmul.mubr.msk.bf16.vlgmr.msra.gmra.mrb[0].mxu1 %vm492_vm0, %v2693_v10  ;;  %v2984_v17 = vld [vmem:[%s2978_s24] sm:$0xff]   ;;  %v2987_v18 = vld [vmem:[%s2978_s24 + $0x10] sm:$0xff]   ;;  %v2990_v19 = vld [vmem:[%s2978_s24 + $0x8] sm:$0xff]  }
  0x18   : > { %2582 = vmatprep.mubr.msk.bf16.mxu1 %vm492_vm0, %v2694_v11  ;;  %2595 = vmatpush3.bf16.msra.mxu1 %v2716_v2  ;;  %v2993_v20 = vld [vmem:[%s2978_s24 + $0x18] sm:$0xff]   ;;  %v3004_v21 = vld [vmem:[%s2978_s24 + $0x28] sm:$0xff]   ;;  %v3007_v22 = vld [vmem:[%s2978_s24 + $0x20] sm:$0xff]  }
  0x19   : > { %2596 = vmatprep.subr.bf16.mxu1 %v2717_v9  ;;  %904 = vrot.lane.b32.xlu0 %v2984_v17, %s2879_s25  ;;  %v2691_v23 = vld [vmem:[%s2949_s17 + $0x38] sm:$0xff]   ;;  %v2697_v24 = vld [vmem:[%s2949_s17 + $0x68] sm:$0xff]   ;;  %v2698_v25 = vld [vmem:[%s2949_s17 + $0x70] sm:$0xff]  }
  0x1a   : > { %908 = vrot.lane.b32.xlu1 %v2987_v18, %s2879_s25  ;;  %v3017_v26 = vld [vmem:[%s2978_s24 + $0x38] sm:$0xff]   ;;  %v3020_v27 = vld [vmem:[%s2978_s24 + $0x30] sm:$0xff]   ;;  %v3030_v28 = vld [vmem:[%s2978_s24 + $0x48] sm:$0xff]   ;;  %2635 = vmatpush3.bf16.msra.mxu0 %v2720_v38 }
  0x1b   : > { %v3033_v29 = vld [vmem:[%s2978_s24 + $0x40] sm:$0xff]   ;;  %v2699_v30 = vld [vmem:[%s2949_s17 + $0x78] sm:$0xff]   ;;  %v384_v32 = vld [vmem:[%s2978_s24 + $0x50] sm:$0xff]  }
  0x1c   : > { %2597 = vmatpush3.bf16.msra.mxu1 %v2717_v9  ;;  %v386_v31 = vld [vmem:[%s2978_s24 + $0x58] sm:$0xff]   ;;  %v390_v33 = vld [vmem:[%s2978_s24 + $0x68] sm:$0xff]   ;;  %v388_v34 = vld [vmem:[%s2978_s24 + $0x60] sm:$0xff]  }
  0x1d   : > { %2598 = vmatprep.subr.bf16.mxu1 %v2718_v12  ;;  %906 = vrot.lane.b32.xlu0 %v2990_v19, %s2879_s25  ;;  %v394_v35 = vld [vmem:[%s2978_s24 + $0x78] sm:$0xff]   ;;  %v392_v36 = vld [vmem:[%s2978_s24 + $0x70] sm:$0xff]  }
  0x1e   : > { %2567 = vmatmul.mubr.msk.bf16.gmra.mrb[4].mxu0 %vm492_vm0, %v2687_v6  ;;  %910 = vrot.lane.b32.xlu1 %v2993_v20, %s2879_s25 }
  0x1f   : > { %2570 = vmatprep.mubr.msk.bf16.mxu0 %vm492_vm0, %v2688_v7  ;;  %2583 = vmatmul.mubr.msk.bf16.gmra.mrb[4].mxu1 %vm492_vm0, %v2695_v15 }
  0x20   : > { %2586 = vmatprep.mubr.msk.bf16.mxu1 %vm492_vm0, %v2696_v16  ;;  %2599 = vmatpush3.bf16.msra.mxu1 %v2718_v12 }
  0x21   : > { %912 = vrot.lane.b32.xlu0 %v3007_v22, %s2879_s25  ;;  %2600 = vmatprep.subr.bf16.mxu1 %v2719_v37 }
  0x22   : > { %914 = vrot.lane.b32.xlu1 %v3004_v21, %s2879_s25 }
  0x24   : > { %2601 = vmatpush3.bf16.msra.mxu1 %v2719_v37 }
  0x25   : > { %916 = vrot.lane.b32.xlu0 %v3020_v27, %s2879_s25 }
  0x26   : > { %2571 = vmatmul.mubr.msk.bf16.gmra.mrb[8].mxu0 %vm492_vm0, %v2689_v13  ;;  %918 = vrot.lane.b32.xlu1 %v3017_v26, %s2879_s25 }
  0x27   : > { %2574 = vmatprep.mubr.msk.bf16.mxu0 %vm492_vm0, %v2690_v14  ;;  %2587 = vmatmul.mubr.msk.bf16.gmra.mrb[8].mxu1 %vm492_vm0, %v2697_v24 }
  0x28   : > { %2590 = vmatprep.mubr.msk.bf16.mxu1 %vm492_vm0, %v2698_v25 }
  0x29   : > { %920 = vrot.lane.b32.xlu0 %v3033_v29, %s2879_s25 }
  0x2a   : > { %922 = vrot.lane.b32.xlu1 %v3030_v28, %s2879_s25 }
  0x2d   : > { %924 = vrot.lane.b32.xlu0 %v384_v32, %s2879_s25 }
  0x2e   : > { %2575 = vmatmul.mubr.msk.bf16.gmra.mrb[12].mxu0 %vm492_vm0, %v2691_v23  ;;  %926 = vrot.lane.b32.xlu1 %v386_v31, %s2879_s25 }
  0x2f   : > { %2591 = vmatmul.mubr.msk.bf16.gmra.mrb[12].mxu1 %vm492_vm0, %v2699_v30 }
  0x31   : > { %928 = vrot.lane.b32.xlu0 %v388_v34, %s2879_s25 }
  0x32   : > { %930 = vrot.lane.b32.xlu1 %v390_v33, %s2879_s25 }
  0x35   : > { %932 = vrot.lane.b32.xlu0 %v392_v36, %s2879_s25 }
  0x36   : > { %934 = vrot.lane.b32.xlu1 %v394_v35, %s2879_s25  ;;  %s3713_s25 = scalar_lea.vmem %s3879_s8, %s2943_s14 }
  0x8b   : > { %v905_v44 = vpop.permute.xlu0 %904 }
  0x8c   : > { %v909_v57 = vpop.permute.xlu1 %908 }
  0x8f   : > { %v907_v56 = vpop.permute.xlu0 %906 }
  0x90   : > { %v911_v34 = vpop.permute.xlu1 %910 }
  0x93   : > { %v3133_v35 = vpop.permute.xlu0 %912 }
  0xe9   : > { %v2564_v40 = vpop.f32.mrb[0].mxu0 }
  0xea   : > { %v709_v42 = vmul.f32 %v2564_v40, %v3066_v39  ;;  %v575_v43 = vpop.f32.mrb[1].mxu0  ;;  %v2580_v61 = vpop.f32.mrb[0].mxu1 }
  0xeb   : > { %v707_v45 = vmul.f32 %v3066_v39, %v575_v43  ;;  %v2565_v46 = vpop.f32.mrb[2].mxu0  ;;  %v725_v1 = vmul.f32 %v2580_v61, %v3066_v39  ;;  %v639_v2 = vpop.f32.mrb[1].mxu1 }
  0xec   : > { %v3076_v47 = vadd.f32 %v3071_v41, %v709_v42  ;;  %v710_v48 = vmul.f32 %v2565_v46, %v3066_v39  ;;  %v578_v49 = vpop.f32.mrb[3].mxu0  ;;  %v723_v6 = vmul.f32 %v3066_v39, %v639_v2  ;;  %v2581_v7 = vpop.f32.mrb[2].mxu1 }
  0xed   : > { %v3080_v50 = vadd.f32 %v3071_v41, %v707_v45  ;;  %v708_v51 = vmul.f32 %v3066_v39, %v578_v49  ;;  %v3110_v11 = vadd.f32 %v3071_v41, %v725_v1  ;;  %v642_v12 = vpop.f32.mrb[3].mxu1  ;;  %v726_v25 = vmul.f32 %v2581_v7, %v3066_v39 }
  0xee   : > { %v3084_v52 = vadd.f32 %v3071_v41, %v710_v48  ;;  %v3911_v54 = vmax.f32 %v3076_v47, 0.0  ;;  %v3118_v16 = vadd.f32 %v3071_v41, %v723_v6  ;;  %v724_v31 = vmul.f32 %v3066_v39, %v642_v12 }
  0xef   : > { %v3087_v53 = vadd.f32 %v3071_v41, %v708_v51  ;;  %v3897_v58 = vmax.f32 %v3080_v50, 0.0  ;;  %v3883_v36 = vmax.f32 %v3110_v11, 0.0  ;;  %v3137_v37 = vadd.f32 %v3071_v41, %v726_v25 }
  0xf0   : > { %v3900_v55 = vmax.f32 %v3084_v52, 0.0  ;;  %v3881_v43 = vmax.f32 %v3118_v16, 0.0 }
  0xf1   : > { %v3896_v59 = vmax.f32 %v3087_v53, 0.0  ;;  %v2568_v60 = vpop.f32.mrb[4].mxu0  ;;  %v3882_v51 = vmax.f32 %v3137_v37, 0.0 }
  0xf2   : > { %v809_v62 = vpack.c.bf16 %v3900_v55, %v3911_v54  ;;  %v713_v63 = vmul.f32 %v2568_v60, %v3066_v39  ;;  %v591_v0 = vpop.f32.mrb[5].mxu0  ;;  %v2584_v45 = vpop.f32.mrb[4].mxu1 }
  0xf3   : > { %v808_v3 = vpack.c.bf16 %v3896_v59, %v3897_v58  ;;  %v711_v4 = vmul.f32 %v3066_v39, %v591_v0  ;;  %v2569_v5 = vpop.f32.mrb[6].mxu0  ;;  %v655_v60 = vpop.f32.mrb[5].mxu1 }
  0xf4   : > { %v3106_v8 = vadd.f32 %v3071_v41, %v713_v63  ;;  %v714_v9 = vmul.f32 %v2569_v5, %v3066_v39  ;;  %v594_v10 = vpop.f32.mrb[7].mxu0  ;;  %v941_v23 = vsel %vm492_vm0, %v809_v62, %v907_v56  ;;  %v729_v56 = vmul.f32 %v2584_v45, %v3066_v39  ;;  %v2585_v1 = vpop.f32.mrb[6].mxu1 }
  0xf5   : > { %v938_v13 = vsel %vm492_vm0, %v808_v3, %v905_v44  ;;  %v3114_v14 = vadd.f32 %v3071_v41, %v711_v4  ;;  %v712_v15 = vmul.f32 %v3066_v39, %v594_v10  ;;  %v3143_v44 = vadd.f32 %v3071_v41, %v724_v31  ;;  %v658_v7 = vpop.f32.mrb[7].mxu1 }
  0xf6   : > { %v3122_v24 = vadd.f32 %v3071_v41, %v714_v9  ;;  %2602 = vmatprep.mubr.msk.bf16.mxu1 %vm1016_vm1, %v938_v13  ;;  %v3895_v32 = vmax.f32 %v3106_v8, 0.0  ;;  %v3166_v5 = vpack.c.bf16 %v3882_v51, %v3883_v36  ;;  %v727_v6 = vmul.f32 %v3066_v39, %v655_v60 }
  0xf7   : > { %v3127_v30 = vadd.f32 %v3071_v41, %v712_v15  ;;  %2603 = vmatmul.mubr.msk.bf16.vlgmr.msra.gmra.mrb[16].mxu1 %vm1016_vm1, %v941_v23  ;;  %v3893_v38 = vmax.f32 %v3114_v14, 0.0  ;;  %v3880_v0 = vmax.f32 %v3143_v44, 0.0  ;;  %v730_v31 = vmul.f32 %v2585_v1, %v3066_v39 }
  0xf8   : > { %v3894_v33 = vmax.f32 %v3122_v24, 0.0 }
  0xf9   : > { %v3888_v40 = vmax.f32 %v3127_v30, 0.0  ;;  %v2572_v42 = vpop.f32.mrb[8].mxu0  ;;  %v3178_v13 = vpack.c.bf16 %v3880_v0, %v3881_v43 }
  0xfa   : > { %v811_v46 = vpack.c.bf16 %v3894_v33, %v3895_v32  ;;  %v717_v48 = vmul.f32 %v2572_v42, %v3066_v39  ;;  %v607_v49 = vpop.f32.mrb[9].mxu0  ;;  %v2588_v1 = vpop.f32.mrb[8].mxu1 }
  0xfb   : > { %v810_v61 = vpack.c.bf16 %v3888_v40, %v3893_v38  ;;  %v715_v62 = vmul.f32 %v3066_v39, %v607_v49  ;;  %v2573_v63 = vpop.f32.mrb[10].mxu0  ;;  %v3199_v49 = vadd.f32 %v3071_v41, %v727_v6 }
  0xfc   : > { %v3159_v2 = vadd.f32 %v3071_v41, %v717_v48  ;;  %v718_v3 = vmul.f32 %v2573_v63, %v3066_v39  ;;  %v610_v4 = vpop.f32.mrb[11].mxu0  ;;  %v947_v15 = vsel %vm492_vm0, %v811_v46, %v911_v34  ;;  %v915_v46 = vpop.permute.xlu1 %914  ;;  %v728_v63 = vmul.f32 %v3066_v39, %v658_v7 }
  0xfd   : > { %v944_v9 = vsel %vm492_vm0, %v810_v61, %v909_v57  ;;  %v3171_v10 = vadd.f32 %v3071_v41, %v715_v62  ;;  %v716_v12 = vmul.f32 %v3066_v39, %v610_v4  ;;  %v3186_v57 = vadd.f32 %v3071_v41, %v729_v56  ;;  %v3196_v48 = vpop.permute.xlu0 %916  ;;  %3922 = vst [vmem:[#allocation2_spill] sm:$0xff] %v3199_v49 }
  0xfe   : > { %v3182_v23 = vadd.f32 %v3071_v41, %v718_v3  ;;  %2606 = vmatprep.mubr.msk.bf16.mxu1 %vm1016_vm1, %v944_v9  ;;  %v3885_v42 = vmax.f32 %v3159_v2, 0.0  ;;  %v3204_v62 = vadd.f32 %v3071_v41, %v730_v31  ;;  %v733_v9 = vmul.f32 %v2588_v1, %v3066_v39 }
  0xff   : > { %v3189_v25 = vadd.f32 %v3071_v41, %v716_v12  ;;  %2607 = vmatmul.mubr.msk.bf16.gmra.mrb[20].mxu1 %vm1016_vm1, %v947_v15  ;;  %v3887_v45 = vmax.f32 %v3171_v10, 0.0  ;;  %v3890_v61 = vmax.f32 %v3186_v57, 0.0  ;;  %v671_v12 = vpop.f32.mrb[9].mxu1  ;;  %v3220_v43 = vadd.f32 %v3071_v41, %v728_v63 }
 0x100   : > { %v3884_v34 = vmax.f32 %v3182_v23, 0.0  ;;  %v3889_v0 = vmax.f32 %v3204_v62, 0.0  ;;  %v2589_v51 = vpop.f32.mrb[10].mxu1  ;;  %v919_v33 = vpop.permute.xlu1 %918 }
 0x101   : > { %v3886_v56 = vmax.f32 %v3189_v25, 0.0  ;;  %v2576_v60 = vpop.f32.mrb[12].mxu0  ;;  %3923 = vst [vmem:[#allocation3_spill] sm:$0xff] %v3220_v43 }
 0x102   : > { %v813_v3 = vpack.c.bf16 %v3884_v34, %v3885_v42  ;;  %v721_v4 = vmul.f32 %v2576_v60, %v3066_v39  ;;  %v623_v6 = vpop.f32.mrb[13].mxu0  ;;  %v3892_v34 = vmax.f32 %v3199_v49, 0.0  ;;  %v3228_v42 = vadd.f32 %v3071_v41, %v733_v9 }
 0x103   : > { %v812_v15 = vpack.c.bf16 %v3886_v56, %v3887_v45  ;;  %v719_v31 = vmul.f32 %v3066_v39, %v623_v6  ;;  %v2577_v7 = vpop.f32.mrb[14].mxu0  ;;  %v674_v56 = vpop.f32.mrb[11].mxu1  ;;  %v3891_v9 = vmax.f32 %v3220_v43, 0.0 }
 0x104   : > { %v3223_v60 = vadd.f32 %v3071_v41, %v721_v4  ;;  %v722_v1 = vmul.f32 %v2577_v7, %v3066_v39  ;;  %v626_v36 = vpop.f32.mrb[15].mxu0  ;;  %3924 = vst [vmem:[#allocation4_spill] sm:$0xff] %v3228_v42  ;;  %v819_v4 = vpack.c.bf16 %v3889_v0, %v3890_v61  ;;  %v953_v7 = vsel %vm492_vm0, %v813_v3, %v915_v46  ;;  %v2592_v61 = vpop.f32.mrb[12].mxu1 }
 0x105   : > { %v3231_v6 = vadd.f32 %v3071_v41, %v719_v31  ;;  %v950_v63 = vsel %vm492_vm0, %v812_v15, %v3133_v35  ;;  %v720_v45 = vmul.f32 %v3066_v39, %v626_v36  ;;  %v731_v36 = vmul.f32 %v3066_v39, %v671_v12  ;;  %v687_v38 = vpop.f32.mrb[13].mxu1 }
 0x106   : > { %v3242_v40 = vadd.f32 %v3071_v41, %v722_v1  ;;  %2610 = vmatprep.mubr.msk.bf16.mxu1 %vm1016_vm1, %v950_v63  ;;  %v3899_v31 = vmax.f32 %v3223_v60, 0.0  ;;  %v734_v15 = vmul.f32 %v2589_v51, %v3066_v39  ;;  %v818_v3 = vpack.c.bf16 %v3891_v9, %v3892_v34  ;;  %v2593_v58 = vpop.f32.mrb[14].mxu1 }
 0x107   : > { %v3248_v35 = vadd.f32 %v3071_v41, %v720_v45  ;;  %2611 = vmatmul.mubr.msk.bf16.gmra.mrb[24].mxu1 %vm1016_vm1, %v953_v7  ;;  %v3910_v1 = vmax.f32 %v3228_v42, 0.0  ;;  %v732_v63 = vmul.f32 %v3066_v39, %v674_v56  ;;  %v3902_v45 = vmax.f32 %v3231_v6, 0.0  ;;  %v921_v7 = vpop.permute.xlu0 %920  ;;  %v690_v55 = vpop.f32.mrb[15].mxu1 }
 0x108   : > { %v3898_v46 = vmax.f32 %v3242_v40, 0.0  ;;  %v3263_v12 = vadd.f32 %v3071_v41, %v731_v36  ;;  %v3266_v51 = vadd.f32 %v3071_v41, %v734_v15  ;;  %v737_v56 = vmul.f32 %v2592_v61, %v3066_v39 }
 0x109   : > { %v3901_v0 = vmax.f32 %v3248_v35, 0.0  ;;  %v3273_v34 = vadd.f32 %v3071_v41, %v732_v63  ;;  %v735_v59 = vmul.f32 %v3066_v39, %v687_v38  ;;  %v962_v63 = vsel %vm492_vm0, %v3178_v13, %v921_v7 }
 0x10a   : > { %3925 = vst [vmem:[#allocation5_spill] sm:$0xff] %v3263_v12  ;;  %3926 = vst [vmem:[#allocation6_spill] sm:$0xff] %v3266_v51  ;;  %v815_v9 = vpack.c.bf16 %v3898_v46, %v3899_v31  ;;  %v3908_v15 = vmax.f32 %v3263_v12, 0.0  ;;  %v3909_v32 = vmax.f32 %v3266_v51, 0.0  ;;  %v3287_v61 = vadd.f32 %v3071_v41, %v737_v56 }
 0x10b   : > { %3927 = vst [vmem:[#allocation7_spill] sm:$0xff] %v3273_v34  ;;  %v814_v36 = vpack.c.bf16 %v3901_v0, %v3902_v45  ;;  %v3903_v46 = vmax.f32 %v3273_v34, 0.0  ;;  %v738_v31 = vmul.f32 %v2593_v58, %v3066_v39  ;;  %v3297_v45 = vadd.f32 %v3071_v41, %v735_v59 }
 0x10c   : > { %3928 = vst [vmem:[#allocation8_spill] sm:$0xff] %v3287_v61  ;;  %v821_v38 = vpack.c.bf16 %v3909_v32, %v3910_v1  ;;  %v736_v13 = vmul.f32 %v3066_v39, %v690_v55  ;;  %v959_v7 = vsel %vm492_vm0, %v815_v9, %v919_v33 }
 0x10d   : > { %v956_v0 = vsel %vm492_vm0, %v814_v36, %v3196_v48  ;;  %3929 = vst [vmem:[#allocation9_spill] sm:$0xff] %v3297_v45  ;;  %v820_v58 = vpack.c.bf16 %v3903_v46, %v3908_v15  ;;  %v3905_v48 = vmax.f32 %v3287_v61, 0.0  ;;  %v3308_v56 = vadd.f32 %v3071_v41, %v738_v31  ;;  %v923_v31 = vpop.permute.xlu1 %922 }
 0x10e   : > { %2614 = vmatprep.mubr.msk.bf16.mxu1 %vm1016_vm1, %v956_v0  ;;  %v3907_v59 = vmax.f32 %v3297_v45, 0.0  ;;  %v3313_v39 = vadd.f32 %v3071_v41, %v736_v13  ;;  %v925_v0 = vpop.permute.xlu0 %924 }
 0x10f   : > { %3930 = vst [vmem:[#allocation10_spill] sm:$0xff] %v3308_v56  ;;  %2615 = vmatmul.mubr.msk.bf16.gmra.mrb[28].mxu1 %vm1016_vm1, %v959_v7  ;;  %v3904_v55 = vmax.f32 %v3308_v56, 0.0  ;;  %v968_v41 = vsel %vm492_vm0, %v818_v3, %v925_v0 }
 0x110   : > { %3931 = vst [vmem:[#allocation11_spill] sm:$0xff] %v3313_v39  ;;  %2618 = vmatprep.mubr.msk.bf16.mxu1 %vm1016_vm1, %v962_v63  ;;  %v3906_v33 = vmax.f32 %v3313_v39, 0.0  ;;  %v965_v63 = vsel %vm492_vm0, %v3166_v5, %v923_v31 }
 0x111   : > { %v823_v9 = vpack.c.bf16 %v3904_v55, %v3905_v48  ;;  %v927_v7 = vpop.permute.xlu1 %926 }
 0x112   : > { %v822_v36 = vpack.c.bf16 %v3906_v33, %v3907_v59  ;;  %v929_v13 = vpop.permute.xlu0 %928  ;;  %v971_v55 = vsel %vm492_vm0, %v819_v4, %v927_v7  ;;  %v3344_v4 = vld [vmem:[%s3876_s5] ss:$0 sm:$0xff] }
 0x113   : > { %v974_v46 = vsel %vm492_vm0, %v820_v58, %v929_v13  ;;  %v3349_v58 = vld [vmem:[%s3876_s5 + $0x1] ss:$0 sm:$0xff] }
 0x115   : > { %v931_v33 = vpop.permute.xlu1 %930 }
 0x116   : > { %v933_v48 = vpop.permute.xlu0 %932  ;;  %v977_v5 = vsel %vm492_vm0, %v821_v38, %v931_v33 }
 0x117   : > { %2619 = vmatmul.mubr.msk.bf16.gmra.mrb[32].mxu1 %vm1016_vm1, %v965_v63  ;;  %v980_v3 = vsel %vm492_vm0, %v822_v36, %v933_v48 }
 0x118   : > { %2622 = vmatprep.mubr.msk.bf16.mxu1 %vm1016_vm1, %v968_v41 }
 0x119   : > { %v935_v0 = vpop.permute.xlu1 %934 }
 0x11a   : > { %v983_v31 = vsel %vm492_vm0, %v823_v9, %v935_v0 }
 0x11f   : > { %2623 = vmatmul.mubr.msk.bf16.gmra.mrb[36].mxu1 %vm1016_vm1, %v971_v55 }
 0x120   : > { %2626 = vmatprep.mubr.msk.bf16.mxu1 %vm1016_vm1, %v974_v46 }
 0x127   : > { %2627 = vmatmul.mubr.msk.bf16.gmra.mrb[40].mxu1 %vm1016_vm1, %v977_v5 }
 0x128   : > { %2630 = vmatprep.mubr.msk.bf16.mxu1 %vm1016_vm1, %v980_v3 }
 0x12f   : > { %2631 = vmatmul.mubr.msk.bf16.gmra.mrb[44].mxu1 %vm1016_vm1, %v983_v31 }
 0x1ca   : > { %v2604_v46 = vpop.f32.mrb[16].mxu1 }
 0x1cb   : > { %v1217_v38 = vmul.f32 %v2604_v46, %v3344_v4  ;;  %v1083_v48 = vpop.f32.mrb[17].mxu1 }
 0x1cc   : > { %v1215_v55 = vmul.f32 %v3344_v4, %v1083_v48  ;;  %v2605_v33 = vpop.f32.mrb[18].mxu1 }
 0x1cd   : > { %v1254_v9 = vadd.f32 %v3349_v58, %v1217_v38  ;;  %v1218_v36 = vmul.f32 %v2605_v33, %v3344_v4  ;;  %v1086_v41 = vpop.f32.mrb[19].mxu1 }
 0x1ce   : > { %v1252_v63 = vadd.f32 %v3349_v58, %v1215_v55  ;;  %v1216_v13 = vmul.f32 %v3344_v4, %v1086_v41 }
 0x1cf   : > { %v1255_v7 = vadd.f32 %v3349_v58, %v1218_v36  ;;  %v1286_v5 = vmax.f32 %v1254_v9, 0.0 }
 0x1d0   : > { %v1253_v3 = vadd.f32 %v3349_v58, %v1216_v13  ;;  %v1284_v31 = vmax.f32 %v1252_v63, 0.0 }
 0x1d1   : > { %v1287_v0 = vmax.f32 %v1255_v7, 0.0 }
 0x1d2   : > { %v1285_v46 = vmax.f32 %v1253_v3, 0.0  ;;  %v2608_v59 = vpop.f32.mrb[20].mxu1 }
 0x1d3   : > { %v1317_v48 = vpack.c.bf16 %v1287_v0, %v1286_v5  ;;  %v1221_v15 = vmul.f32 %v2608_v59, %v3344_v4  ;;  %v1099_v38 = vpop.f32.mrb[21].mxu1 }
 0x1d4   : > { %v1316_v33 = vpack.c.bf16 %v1285_v46, %v1284_v31  ;;  %v1219_v32 = vmul.f32 %v3344_v4, %v1099_v38  ;;  %v2609_v55 = vpop.f32.mrb[22].mxu1 }
 0x1d5   : > { %v1258_v41 = vadd.f32 %v3349_v58, %v1221_v15  ;;  %v1222_v36 = vmul.f32 %v2609_v55, %v3344_v4  ;;  %v1102_v1 = vpop.f32.mrb[23].mxu1 }
 0x1d6   : > { %v1256_v9 = vadd.f32 %v3349_v58, %v1219_v32  ;;  %v1220_v63 = vmul.f32 %v3344_v4, %v1102_v1  ;;  %2636 = vmatprep.mubr.msk.bf16.mxu0 %vm1340_vm2, %v1316_v33 }
 0x1d7   : > { %v1259_v13 = vadd.f32 %v3349_v58, %v1222_v36  ;;  %2637 = vmatmul.mubr.msk.bf16.vlgmr.msra.gmra.mrb[16].mxu0 %vm1340_vm2, %v1317_v48  ;;  %v1290_v7 = vmax.f32 %v1258_v41, 0.0 }
 0x1d8   : > { %v1257_v59 = vadd.f32 %v3349_v58, %v1220_v63  ;;  %v1288_v5 = vmax.f32 %v1256_v9, 0.0 }
 0x1d9   : > { %v1291_v3 = vmax.f32 %v1259_v13, 0.0 }
 0x1da   : > { %v1289_v0 = vmax.f32 %v1257_v59, 0.0  ;;  %v2612_v15 = vpop.f32.mrb[24].mxu1 }
 0x1db   : > { %v1319_v31 = vpack.c.bf16 %v1291_v3, %v1290_v7  ;;  %v1225_v46 = vmul.f32 %v2612_v15, %v3344_v4  ;;  %v1115_v38 = vpop.f32.mrb[25].mxu1 }
 0x1dc   : > { %v1318_v32 = vpack.c.bf16 %v1289_v0, %v1288_v5  ;;  %v1223_v1 = vmul.f32 %v3344_v4, %v1115_v38  ;;  %v2613_v55 = vpop.f32.mrb[26].mxu1 }
 0x1dd   : > { %v1262_v33 = vadd.f32 %v3349_v58, %v1225_v46  ;;  %v1226_v36 = vmul.f32 %v2613_v55, %v3344_v4  ;;  %v1118_v48 = vpop.f32.mrb[27].mxu1 }
 0x1de   : > { %v1260_v63 = vadd.f32 %v3349_v58, %v1223_v1  ;;  %v1224_v41 = vmul.f32 %v3344_v4, %v1118_v48  ;;  %2640 = vmatprep.mubr.msk.bf16.mxu0 %vm1340_vm2, %v1318_v32 }
 0x1df   : > { %v1263_v9 = vadd.f32 %v3349_v58, %v1226_v36  ;;  %2641 = vmatmul.mubr.msk.bf16.gmra.mrb[20].mxu0 %vm1340_vm2, %v1319_v31  ;;  %v1294_v59 = vmax.f32 %v1262_v33, 0.0 }
 0x1e0   : > { %v1261_v13 = vadd.f32 %v3349_v58, %v1224_v41  ;;  %v1292_v3 = vmax.f32 %v1260_v63, 0.0 }
 0x1e1   : > { %v1295_v7 = vmax.f32 %v1263_v9, 0.0 }
 0x1e2   : > { %v1293_v5 = vmax.f32 %v1261_v13, 0.0  ;;  %v2616_v0 = vpop.f32.mrb[28].mxu1 }
 0x1e3   : > { %v1321_v15 = vpack.c.bf16 %v1295_v7, %v1294_v59  ;;  %v1229_v46 = vmul.f32 %v2616_v0, %v3344_v4  ;;  %v1131_v38 = vpop.f32.mrb[29].mxu1 }
 0x1e4   : > { %v1320_v1 = vpack.c.bf16 %v1293_v5, %v1292_v3  ;;  %v1227_v55 = vmul.f32 %v3344_v4, %v1131_v38  ;;  %v2617_v48 = vpop.f32.mrb[30].mxu1 }
 0x1e5   : > { %v1266_v32 = vadd.f32 %v3349_v58, %v1229_v46  ;;  %v1230_v36 = vmul.f32 %v2617_v48, %v3344_v4  ;;  %v1134_v31 = vpop.f32.mrb[31].mxu1 }
 0x1e6   : > { %v1264_v41 = vadd.f32 %v3349_v58, %v1227_v55  ;;  %v1228_v33 = vmul.f32 %v3344_v4, %v1134_v31  ;;  %2644 = vmatprep.mubr.msk.bf16.mxu0 %vm1340_vm2, %v1320_v1 }
 0x1e7   : > { %v1267_v63 = vadd.f32 %v3349_v58, %v1230_v36  ;;  %2645 = vmatmul.mubr.msk.bf16.gmra.mrb[24].mxu0 %vm1340_vm2, %v1321_v15  ;;  %v1298_v13 = vmax.f32 %v1266_v32, 0.0 }
 0x1e8   : > { %v1265_v9 = vadd.f32 %v3349_v58, %v1228_v33  ;;  %v1296_v7 = vmax.f32 %v1264_v41, 0.0 }
 0x1e9   : > { %v1299_v59 = vmax.f32 %v1267_v63, 0.0 }
 0x1ea   : > { %v1297_v3 = vmax.f32 %v1265_v9, 0.0  ;;  %v2620_v5 = vpop.f32.mrb[32].mxu1 }
 0x1eb   : > { %v1323_v0 = vpack.c.bf16 %v1299_v59, %v1298_v13  ;;  %v1233_v46 = vmul.f32 %v2620_v5, %v3344_v4  ;;  %v1147_v38 = vpop.f32.mrb[33].mxu1 }
 0x1ec   : > { %v1322_v55 = vpack.c.bf16 %v1297_v3, %v1296_v7  ;;  %v1231_v48 = vmul.f32 %v3344_v4, %v1147_v38  ;;  %v2621_v31 = vpop.f32.mrb[34].mxu1 }
 0x1ed   : > { %v1270_v1 = vadd.f32 %v3349_v58, %v1233_v46  ;;  %v1234_v36 = vmul.f32 %v2621_v31, %v3344_v4  ;;  %v1150_v15 = vpop.f32.mrb[35].mxu1 }
 0x1ee   : > { %v1268_v33 = vadd.f32 %v3349_v58, %v1231_v48  ;;  %v1232_v32 = vmul.f32 %v3344_v4, %v1150_v15  ;;  %2648 = vmatprep.mubr.msk.bf16.mxu0 %vm1340_vm2, %v1322_v55 }
 0x1ef   : > { %v1271_v41 = vadd.f32 %v3349_v58, %v1234_v36  ;;  %2649 = vmatmul.mubr.msk.bf16.gmra.mrb[28].mxu0 %vm1340_vm2, %v1323_v0  ;;  %v1302_v9 = vmax.f32 %v1270_v1, 0.0 }
 0x1f0   : > { %v1269_v63 = vadd.f32 %v3349_v58, %v1232_v32  ;;  %v1300_v59 = vmax.f32 %v1268_v33, 0.0 }
 0x1f1   : > { %v1303_v13 = vmax.f32 %v1271_v41, 0.0 }
 0x1f2   : > { %v1301_v7 = vmax.f32 %v1269_v63, 0.0  ;;  %v2624_v3 = vpop.f32.mrb[36].mxu1 }
 0x1f3   : > { %v1325_v5 = vpack.c.bf16 %v1303_v13, %v1302_v9  ;;  %v1237_v46 = vmul.f32 %v2624_v3, %v3344_v4  ;;  %v1163_v38 = vpop.f32.mrb[37].mxu1 }
 0x1f4   : > { %v1324_v48 = vpack.c.bf16 %v1301_v7, %v1300_v59  ;;  %v1235_v31 = vmul.f32 %v3344_v4, %v1163_v38  ;;  %v2625_v15 = vpop.f32.mrb[38].mxu1 }
 0x1f5   : > { %v1274_v55 = vadd.f32 %v3349_v58, %v1237_v46  ;;  %v1238_v36 = vmul.f32 %v2625_v15, %v3344_v4  ;;  %v1166_v0 = vpop.f32.mrb[39].mxu1 }
 0x1f6   : > { %v1272_v32 = vadd.f32 %v3349_v58, %v1235_v31  ;;  %v1236_v1 = vmul.f32 %v3344_v4, %v1166_v0  ;;  %2652 = vmatprep.mubr.msk.bf16.mxu0 %vm1340_vm2, %v1324_v48 }
 0x1f7   : > { %v1275_v33 = vadd.f32 %v3349_v58, %v1238_v36  ;;  %2653 = vmatmul.mubr.msk.bf16.gmra.mrb[32].mxu0 %vm1340_vm2, %v1325_v5  ;;  %v1306_v63 = vmax.f32 %v1274_v55, 0.0 }
 0x1f8   : > { %v1273_v41 = vadd.f32 %v3349_v58, %v1236_v1  ;;  %v1304_v13 = vmax.f32 %v1272_v32, 0.0 }
 0x1f9   : > { %v1307_v9 = vmax.f32 %v1275_v33, 0.0 }
 0x1fa   : > { %v1305_v59 = vmax.f32 %v1273_v41, 0.0  ;;  %v2628_v7 = vpop.f32.mrb[40].mxu1 }
 0x1fb   : > { %v1327_v3 = vpack.c.bf16 %v1307_v9, %v1306_v63  ;;  %v1241_v46 = vmul.f32 %v2628_v7, %v3344_v4  ;;  %v1179_v38 = vpop.f32.mrb[41].mxu1 }
 0x1fc   : > { %v1326_v31 = vpack.c.bf16 %v1305_v59, %v1304_v13  ;;  %v1239_v15 = vmul.f32 %v3344_v4, %v1179_v38  ;;  %v2629_v0 = vpop.f32.mrb[42].mxu1 }
 0x1fd   : > { %v1278_v48 = vadd.f32 %v3349_v58, %v1241_v46  ;;  %v1242_v36 = vmul.f32 %v2629_v0, %v3344_v4  ;;  %v1182_v5 = vpop.f32.mrb[43].mxu1 }
 0x1fe   : > { %v1276_v1 = vadd.f32 %v3349_v58, %v1239_v15  ;;  %v1240_v55 = vmul.f32 %v3344_v4, %v1182_v5  ;;  %2656 = vmatprep.mubr.msk.bf16.mxu0 %vm1340_vm2, %v1326_v31 }
 0x1ff   : > { %v1279_v32 = vadd.f32 %v3349_v58, %v1242_v36  ;;  %2657 = vmatmul.mubr.msk.bf16.gmra.mrb[36].mxu0 %vm1340_vm2, %v1327_v3  ;;  %v1310_v41 = vmax.f32 %v1278_v48, 0.0 }
 0x200   : > { %v1277_v33 = vadd.f32 %v3349_v58, %v1240_v55  ;;  %v1308_v9 = vmax.f32 %v1276_v1, 0.0 }
 0x201   : > { %v1311_v63 = vmax.f32 %v1279_v32, 0.0 }
 0x202   : > { %v1309_v13 = vmax.f32 %v1277_v33, 0.0  ;;  %v2632_v59 = vpop.f32.mrb[44].mxu1 }
 0x203   : > { %v1329_v7 = vpack.c.bf16 %v1311_v63, %v1310_v41  ;;  %v1245_v46 = vmul.f32 %v2632_v59, %v3344_v4  ;;  %v1195_v38 = vpop.f32.mrb[45].mxu1 }
 0x204   : > { %v1328_v15 = vpack.c.bf16 %v1309_v13, %v1308_v9  ;;  %v1243_v0 = vmul.f32 %v3344_v4, %v1195_v38  ;;  %v2633_v5 = vpop.f32.mrb[46].mxu1 }
 0x205   : > { %v1282_v31 = vadd.f32 %v3349_v58, %v1245_v46  ;;  %v1246_v36 = vmul.f32 %v2633_v5, %v3344_v4  ;;  %v1198_v3 = vpop.f32.mrb[47].mxu1  ;;  %v1788_v5 = vunpack.c.l.bf16 %v2987_v18 }
 0x206   : > { %v1280_v55 = vadd.f32 %v3349_v58, %v1243_v0  ;;  %v1244_v48 = vmul.f32 %v3344_v4, %v1198_v3  ;;  %2660 = vmatprep.mubr.msk.bf16.mxu0 %vm1340_vm2, %v1328_v15  ;;  %v3434_v4 = vld [vmem:[%s3878_s7] ss:$0 sm:$0xff]  ;;  %v1785_v0 = vunpack.c.h.bf16 %v2984_v17 }
 0x207   : > { %v1283_v1 = vadd.f32 %v3349_v58, %v1246_v36  ;;  %2661 = vmatmul.mubr.msk.bf16.gmra.mrb[40].mxu0 %vm1340_vm2, %v1329_v7  ;;  %v1314_v33 = vmax.f32 %v1282_v31, 0.0  ;;  %v1784_v7 = vunpack.c.l.bf16 %v2984_v17  ;;  %v1787_v17 = vunpack.c.h.bf16 %v2990_v19 }
 0x208   : > { %v1281_v32 = vadd.f32 %v3349_v58, %v1244_v48  ;;  %v1312_v63 = vmax.f32 %v1280_v55, 0.0  ;;  %v3439_v58 = vld [vmem:[%s3878_s7 + $0x1] ss:$0 sm:$0xff] }
 0x209   : > { %v1315_v41 = vmax.f32 %v1283_v1, 0.0  ;;  %v1786_v1 = vunpack.c.l.bf16 %v2990_v19 }
 0x20a   : > { %v1313_v9 = vmax.f32 %v1281_v32, 0.0  ;;  %v1789_v32 = vunpack.c.h.bf16 %v2987_v18  ;;  %v1790_v18 = vunpack.c.l.bf16 %v2993_v20 }
 0x20b   : > { %v1331_v13 = vpack.c.bf16 %v1315_v41, %v1314_v33  ;;  %v3485_v61 = vmul.f32 2.0, %v1786_v1 }
 0x20c   : > { %v1330_v59 = vpack.c.bf16 %v1313_v9, %v1312_v63  ;;  %v3452_v63 = vmul.f32 2.0, %v1784_v7  ;;  %v3463_v7 = vmul.f32 2.0, %v1789_v32 }
 0x20e   : > { %2664 = vmatprep.mubr.msk.bf16.mxu0 %vm1340_vm2, %v1330_v59  ;;  %v3456_v59 = vmul.f32 2.0, %v1785_v0 }
 0x20f   : > { %2665 = vmatmul.mubr.msk.bf16.gmra.mrb[44].mxu0 %vm1340_vm2, %v1331_v13 }
 0x2aa   : > { %v2638_v46 = vpop.f32.mrb[16].mxu0 }
 0x2ab   : > { %v1557_v38 = vmul.f32 %v2638_v46, %v3434_v4  ;;  %v1423_v15 = vpop.f32.mrb[17].mxu0  ;;  %v3458_v46 = vmul.f32 2.0, %v1788_v5 }
 0x2ac   : > { %v1555_v31 = vmul.f32 %v3434_v4, %v1423_v15  ;;  %v2639_v36 = vpop.f32.mrb[18].mxu0 }
 0x2ad   : > { %v1594_v3 = vadd.f32 %v3439_v58, %v1557_v38  ;;  %v1558_v55 = vmul.f32 %v2639_v36, %v3434_v4  ;;  %v1426_v48 = vpop.f32.mrb[19].mxu0 }
 0x2ae   : > { %v1592_v33 = vadd.f32 %v3439_v58, %v1555_v31  ;;  %v1556_v41 = vmul.f32 %v3434_v4, %v1426_v48  ;;  %v1791_v31 = vunpack.c.h.bf16 %v2993_v20 }
 0x2af   : > { %v1626_v9 = vsub.f32 0.0, %v1594_v3  ;;  %v1595_v13 = vadd.f32 %v3439_v58, %v1558_v55 }
 0x2b0   : > { %v1624_v38 = vsub.f32 0.0, %v1592_v33  ;;  %v1593_v15 = vadd.f32 %v3439_v58, %v1556_v41 }
 0x2b1   : > { %v1660_v36 = vmul.f32 1.442695, %v1626_v9  ;;  %v1627_v48 = vsub.f32 0.0, %v1595_v13 }
 0x2b2   : > { %v1656_v3 = vmul.f32 1.442695, %v1624_v38  ;;  %v1625_v54 = vsub.f32 0.0, %v1593_v15  ;;  %v2642_v55 = vpop.f32.mrb[20].mxu0 }
 0x2b3   : > { %2737 = vpow2.f32 %v1660_v36  ;;  %v1662_v5 = vmul.f32 1.442695, %v1627_v48  ;;  %v1561_v33 = vmul.f32 %v2642_v55, %v3434_v4  ;;  %v1439_v41 = vpop.f32.mrb[21].mxu0 }
 0x2b4   : > { %2739 = vpow2.f32 %v1656_v3  ;;  %v1658_v20 = vmul.f32 1.442695, %v1625_v54  ;;  %v1559_v9 = vmul.f32 %v3434_v4, %v1439_v41  ;;  %v2643_v32 = vpop.f32.mrb[22].mxu0 }
 0x2b5   : > { %2741 = vpow2.f32 %v1662_v5  ;;  %v1598_v38 = vadd.f32 %v3439_v58, %v1561_v33  ;;  %v1562_v15 = vmul.f32 %v2643_v32, %v3434_v4  ;;  %v1442_v0 = vpop.f32.mrb[23].mxu0  ;;  %v3488_v5 = vmul.f32 2.0, %v1787_v17 }
 0x2b6   : > { %2743 = vpow2.f32 %v1658_v20  ;;  %v1596_v48 = vadd.f32 %v3439_v58, %v1559_v9  ;;  %v1560_v55 = vmul.f32 %v3434_v4, %v1442_v0 }
 0x2b7   : > { %v1630_v41 = vsub.f32 0.0, %v1598_v38  ;;  %v1599_v13 = vadd.f32 %v3439_v58, %v1562_v15 }
 0x2b8   : > { %v1628_v32 = vsub.f32 0.0, %v1596_v48  ;;  %v1597_v56 = vadd.f32 %v3439_v58, %v1560_v55 }
 0x2b9   : > { %v1668_v36 = vmul.f32 1.442695, %v1630_v41  ;;  %v1631_v0 = vsub.f32 0.0, %v1599_v13  ;;  %v3491_v13 = vmul.f32 2.0, %v1790_v18 }
 0x2ba   : > { %v1664_v19 = vmul.f32 1.442695, %v1628_v32  ;;  %v1629_v3 = vsub.f32 0.0, %v1597_v56  ;;  %v2646_v38 = vpop.f32.mrb[24].mxu0  ;;  %v3495_v32 = vmul.f32 2.0, %v1791_v31 }
 0x2bb   : > { %2745 = vpow2.f32 %v1668_v36  ;;  %v1670_v15 = vmul.f32 1.442695, %v1631_v0  ;;  %v1565_v33 = vmul.f32 %v2646_v38, %v3434_v4  ;;  %v1455_v48 = vpop.f32.mrb[25].mxu0 }
 0x2bc   : > { %2747 = vpow2.f32 %v1664_v19  ;;  %v1666_v55 = vmul.f32 1.442695, %v1629_v3  ;;  %v1563_v20 = vmul.f32 %v3434_v4, %v1455_v48  ;;  %v2647_v41 = vpop.f32.mrb[26].mxu0 }
 0x2bd   : > { %v2738_v54 = vpop.eup %2737  ;;  %2749 = vpow2.f32 %v1670_v15  ;;  %v1602_v56 = vadd.f32 %v3439_v58, %v1565_v33  ;;  %v1566_v1 = vmul.f32 %v2647_v41, %v3434_v4  ;;  %v1458_v36 = vpop.f32.mrb[27].mxu0  ;;  %v3932_v15 = vunpack.c.l.bf16 %v3004_v21 }
 0x2be   : > { %v2740_v0 = vpop.eup %2739  ;;  %v1722_v38 = vadd.f32 1.0, %v2738_v54  ;;  %2751 = vpow2.f32 %v1666_v55  ;;  %v1600_v17 = vadd.f32 %v3439_v58, %v1563_v20  ;;  %v1564_v19 = vmul.f32 %v3434_v4, %v1458_v36 }
 0x2bf   : > { %v2742_v3 = vpop.eup %2741  ;;  %v1720_v48 = vadd.f32 1.0, %v2740_v0  ;;  %v1634_v18 = vsub.f32 0.0, %v1602_v56  ;;  %v1603_v9 = vadd.f32 %v3439_v58, %v1566_v1  ;;  %v3502_v33 = vmul.f32 2.0, %v3932_v15 }
 0x2c0   : > { %v2744_v41 = vpop.eup %2743  ;;  %2753 = vrcp.f32 %v1722_v38  ;;  %v1723_v31 = vadd.f32 1.0, %v2742_v3  ;;  %v1632_v39 = vsub.f32 0.0, %v1600_v17  ;;  %v1601_v54 = vadd.f32 %v3439_v58, %v1564_v19 }
 0x2c1   : > { %2755 = vrcp.f32 %v1720_v48  ;;  %v1721_v55 = vadd.f32 1.0, %v2744_v41  ;;  %v1676_v20 = vmul.f32 1.442695, %v1634_v18  ;;  %v1635_v45 = vsub.f32 0.0, %v1603_v9 }
 0x2c2   : > { %2757 = vrcp.f32 %v1723_v31  ;;  %v1672_v36 = vmul.f32 1.442695, %v1632_v39  ;;  %v1633_v0 = vsub.f32 0.0, %v1601_v54  ;;  %v2650_v56 = vpop.f32.mrb[28].mxu0  ;;  %v3933_v1 = vunpack.c.h.bf16 %v3004_v21 }
 0x2c3   : > { %2759 = vrcp.f32 %v1721_v55  ;;  %v1678_v15 = vmul.f32 1.442695, %v1635_v45  ;;  %v1569_v38 = vmul.f32 %v2650_v56, %v3434_v4  ;;  %v1471_v3 = vpop.f32.mrb[29].mxu0  ;;  %v3934_v17 = vunpack.c.l.bf16 %v3007_v22 }
 0x2c4   : > { %v3507_v34 = vmul.f32 2.0, %v3933_v1  ;;  %2761 = vpow2.f32 %v1676_v20  ;;  %v1674_v48 = vmul.f32 1.442695, %v1633_v0  ;;  %v1567_v9 = vmul.f32 %v3434_v4, %v1471_v3  ;;  %v2651_v39 = vpop.f32.mrb[30].mxu0 }
 0x2c5   : > { %v3512_v19 = vmul.f32 2.0, %v3934_v17  ;;  %v3935_v18 = vunpack.c.h.bf16 %v3007_v22  ;;  %v2746_v21 = vpop.eup %2745  ;;  %2763 = vpow2.f32 %v1672_v36  ;;  %v1606_v45 = vadd.f32 %v3439_v58, %v1569_v38  ;;  %v1474_v54 = vpop.f32.mrb[31].mxu0 }
 0x2c6   : > { %v1570_v31 = vmul.f32 %v2651_v39, %v3434_v4  ;;  %v3936_v55 = vunpack.c.l.bf16 %v3017_v26  ;;  %v2748_v20 = vpop.eup %2747  ;;  %v1726_v0 = vadd.f32 1.0, %v2746_v21  ;;  %2765 = vpow2.f32 %v1678_v15 }
 0x2c7   : > { %v3517_v41 = vmul.f32 2.0, %v3935_v18  ;;  %v1604_v1 = vadd.f32 %v3439_v58, %v1567_v9  ;;  %v1568_v22 = vmul.f32 %v3434_v4, %v1474_v54  ;;  %v2750_v3 = vpop.eup %2749  ;;  %v1724_v17 = vadd.f32 1.0, %v2748_v20 }
 0x2c8   : > { %v3523_v56 = vmul.f32 2.0, %v3936_v55  ;;  %2767 = vpow2.f32 %v1674_v48  ;;  %v1638_v36 = vsub.f32 0.0, %v1606_v45  ;;  %v1607_v38 = vadd.f32 %v3439_v58, %v1570_v31  ;;  %v2752_v18 = vpop.eup %2751 }
 0x2c9   : > { %2769 = vrcp.f32 %v1726_v0  ;;  %v1727_v39 = vadd.f32 1.0, %v2750_v3  ;;  %v1636_v12 = vsub.f32 0.0, %v1604_v1  ;;  %v1605_v55 = vadd.f32 %v3439_v58, %v1568_v22 }
 0x2ca   : > { %2771 = vrcp.f32 %v1724_v17  ;;  %v1725_v51 = vadd.f32 1.0, %v2752_v18  ;;  %v1684_v21 = vmul.f32 1.442695, %v1638_v36  ;;  %v1639_v15 = vsub.f32 0.0, %v1607_v38  ;;  %v2754_v42 = vpop.eup %2753  ;;  %v2654_v43 = vpop.f32.mrb[32].mxu0 }
 0x2cb   : > { %2773 = vrcp.f32 %v1727_v39  ;;  %v1680_v9 = vmul.f32 1.442695, %v1636_v12  ;;  %v1637_v54 = vsub.f32 0.0, %v1605_v55  ;;  %v3937_v48 = vunpack.c.l.bf16 %v3020_v27  ;;  %v2756_v31 = vpop.eup %2755  ;;  %1948 = vrot.lane.b32.xlu0 %v2754_v42, %s2880_s22  ;;  %v1487_v1 = vpop.f32.mrb[33].mxu0 }
 0x2cc   : > { %2775 = vrcp.f32 %v1725_v51  ;;  %v1686_v20 = vmul.f32 1.442695, %v1639_v15  ;;  %v1573_v0 = vmul.f32 %v2654_v43, %v3434_v4  ;;  %v3536_v22 = vmul.f32 %v2754_v42, %v3485_v61  ;;  %v2758_v3 = vpop.eup %2757  ;;  %v2655_v36 = vpop.f32.mrb[34].mxu0 }
 0x2cd   : > { %v3531_v45 = vmul.f32 2.0, %v3937_v48  ;;  %2777 = vpow2.f32 %v1684_v21  ;;  %v1682_v12 = vmul.f32 1.442695, %v1637_v54  ;;  %v1571_v17 = vmul.f32 %v3434_v4, %v1487_v1  ;;  %v2760_v51 = vpop.eup %2759  ;;  %1950 = vrot.lane.b32.xlu1 %v2758_v3, %s2880_s22  ;;  %v1490_v39 = vpop.f32.mrb[35].mxu0 }
 0x2ce   : > { %v3540_v38 = vmul.f32 %v2756_v31, %v3452_v63  ;;  %2779 = vpow2.f32 %v1680_v9  ;;  %v1610_v43 = vadd.f32 %v3439_v58, %v1573_v0  ;;  %v1574_v18 = vmul.f32 %v2655_v36, %v3434_v4  ;;  %v2762_v61 = vpop.eup %2761 }
 0x2cf   : > { %v3546_v42 = vmul.f32 %v2758_v3, %v3488_v5  ;;  %2781 = vpow2.f32 %v1686_v20  ;;  %v1608_v55 = vadd.f32 %v3439_v58, %v1571_v17  ;;  %v1572_v21 = vmul.f32 %v3434_v4, %v1490_v39  ;;  %v2764_v15 = vpop.eup %2763  ;;  %1944 = vrot.lane.b32.xlu0 %v2756_v31, %s2880_s22 }
 0x2d0   : > { %v3551_v63 = vmul.f32 %v2760_v51, %v3456_v59  ;;  %v1730_v9 = vadd.f32 1.0, %v2762_v61  ;;  %2783 = vpow2.f32 %v1682_v12  ;;  %v1642_v54 = vsub.f32 0.0, %v1610_v43  ;;  %v2766_v0 = vpop.eup %2765 }
 0x2d1   : > { %v1611_v48 = vadd.f32 %v3439_v58, %v1574_v18  ;;  %v1728_v5 = vadd.f32 1.0, %v2764_v15  ;;  %v1640_v1 = vsub.f32 0.0, %v1608_v55  ;;  %v1609_v20 = vadd.f32 %v3439_v58, %v1572_v21  ;;  %1946 = vrot.lane.b32.xlu1 %v2760_v51, %s2880_s22 }
 0x2d2   : > { %v3938_v3 = vunpack.c.h.bf16 %v3017_v26  ;;  %v2768_v36 = vpop.eup %2767  ;;  %2785 = vrcp.f32 %v1730_v9  ;;  %v1731_v59 = vadd.f32 1.0, %v2766_v0  ;;  %v1692_v39 = vmul.f32 1.442695, %v1642_v54  ;;  %v2658_v15 = vpop.f32.mrb[36].mxu0 }
 0x2d3   : > { %v1643_v61 = vsub.f32 0.0, %v1611_v48  ;;  %v2770_v12 = vpop.eup %2769  ;;  %2787 = vrcp.f32 %v1728_v5  ;;  %v1729_v43 = vadd.f32 1.0, %v2768_v36  ;;  %v1688_v31 = vmul.f32 1.442695, %v1640_v1 }
 0x2d4   : > { %v3558_v17 = vmul.f32 2.0, %v3938_v3  ;;  %v1641_v18 = vsub.f32 0.0, %v1609_v20  ;;  %v2772_v55 = vpop.eup %2771  ;;  %2789 = vrcp.f32 %v1731_v59  ;;  %v1577_v26 = vmul.f32 %v2658_v15, %v3434_v4  ;;  %1956 = vrot.lane.b32.xlu0 %v2770_v12, %s2880_s22  ;;  %v1503_v3 = vpop.f32.mrb[37].mxu0 }
 0x2d5   : > { %v1694_v21 = vmul.f32 1.442695, %v1643_v61  ;;  %v3564_v9 = vmul.f32 %v2770_v12, %v3491_v13  ;;  %v2774_v54 = vpop.eup %2773  ;;  %2791 = vrcp.f32 %v1729_v43  ;;  %v1575_v48 = vmul.f32 %v3434_v4, %v1503_v3  ;;  %v2659_v0 = vpop.f32.mrb[38].mxu0 }
 0x2d6   : > { %v1690_v51 = vmul.f32 1.442695, %v1641_v18  ;;  %v3568_v5 = vmul.f32 %v2772_v55, %v3458_v46  ;;  %v2776_v1 = vpop.eup %2775  ;;  %2793 = vpow2.f32 %v1692_v39  ;;  %v1614_v20 = vadd.f32 %v3439_v58, %v1577_v26  ;;  %1958 = vrot.lane.b32.xlu1 %v2774_v54, %s2880_s22  ;;  %v1506_v59 = vpop.f32.mrb[39].mxu0 }
 0x2d7   : > { %v1578_v36 = vmul.f32 %v2659_v0, %v3434_v4  ;;  %v3574_v13 = vmul.f32 %v2774_v54, %v3495_v32  ;;  %v2778_v61 = vpop.eup %2777  ;;  %2795 = vpow2.f32 %v1688_v31  ;;  %v1612_v12 = vadd.f32 %v3439_v58, %v1575_v48 }
 0x2d8   : > { %v1576_v43 = vmul.f32 %v3434_v4, %v1506_v59  ;;  %v3579_v46 = vmul.f32 %v2776_v1, %v3463_v7  ;;  %v2780_v39 = vpop.eup %2779  ;;  %v1734_v18 = vadd.f32 1.0, %v2778_v61  ;;  %2797 = vpow2.f32 %v1694_v21  ;;  %1952 = vrot.lane.b32.xlu0 %v2772_v55, %s2880_s22 }
 0x2d9   : > { %v1646_v15 = vsub.f32 0.0, %v1614_v20  ;;  %v1615_v26 = vadd.f32 %v3439_v58, %v1578_v36  ;;  %v2782_v3 = vpop.eup %2781  ;;  %v1732_v32 = vadd.f32 1.0, %v2780_v39  ;;  %2799 = vpow2.f32 %v1690_v51 }
 0x2da   : > { %v1644_v54 = vsub.f32 0.0, %v1612_v12  ;;  %v1613_v31 = vadd.f32 %v3439_v58, %v1576_v43  ;;  %v2784_v48 = vpop.eup %2783  ;;  %2801 = vrcp.f32 %v1734_v18  ;;  %v1735_v0 = vadd.f32 1.0, %v2782_v3  ;;  %1954 = vrot.lane.b32.xlu1 %v2776_v1, %s2880_s22  ;;  %v2662_v36 = vpop.f32.mrb[40].mxu0 }
 0x2db   : > { %v1700_v59 = vmul.f32 1.442695, %v1646_v15  ;;  %v1647_v7 = vsub.f32 0.0, %v1615_v26  ;;  %2803 = vrcp.f32 %v1732_v32  ;;  %v1733_v21 = vadd.f32 1.0, %v2784_v48  ;;  %v1519_v12 = vpop.f32.mrb[41].mxu0 }
 0x2dc   : > { %v1696_v20 = vmul.f32 1.442695, %v1644_v54  ;;  %v1645_v61 = vsub.f32 0.0, %v1613_v31  ;;  %v2786_v49 = vpop.eup %2785  ;;  %2805 = vrcp.f32 %v1735_v0  ;;  %v1581_v51 = vmul.f32 %v2662_v36, %v3434_v4  ;;  %v2663_v26 = vpop.f32.mrb[42].mxu0 }
 0x2dd   : > { %v1702_v55 = vmul.f32 1.442695, %v1647_v7  ;;  %v3939_v43 = vunpack.c.h.bf16 %v3020_v27  ;;  %v2788_v18 = vpop.eup %2787  ;;  %2807 = vrcp.f32 %v1733_v21  ;;  %1964 = vrot.lane.b32.xlu0 %v2786_v49, %s2880_s22  ;;  %v1579_v1 = vmul.f32 %v3434_v4, %v1519_v12  ;;  %v1522_v27 = vpop.f32.mrb[43].mxu0 }
 0x2de   : > { %v1698_v15 = vmul.f32 1.442695, %v1645_v61  ;;  %v3593_v3 = vmul.f32 %v2786_v49, %v3502_v33  ;;  %v2790_v32 = vpop.eup %2789  ;;  %2809 = vpow2.f32 %v1700_v59  ;;  %v1618_v54 = vadd.f32 %v3439_v58, %v1581_v51 }
 0x2df   : > { %v3588_v39 = vmul.f32 2.0, %v3939_v43  ;;  %v1582_v31 = vmul.f32 %v2663_v26, %v3434_v4  ;;  %v3598_v48 = vmul.f32 %v2788_v18, %v3512_v19  ;;  %v2792_v0 = vpop.eup %2791  ;;  %2811 = vpow2.f32 %v1696_v20  ;;  %1966 = vrot.lane.b32.xlu1 %v2790_v32, %s2880_s22 }
 0x2e0   : > { %v1616_v7 = vadd.f32 %v3439_v58, %v1579_v1  ;;  %v1580_v21 = vmul.f32 %v3434_v4, %v1522_v27  ;;  %v3604_v49 = vmul.f32 %v2790_v32, %v3507_v34  ;;  %v2794_v33 = vpop.eup %2793  ;;  %2813 = vpow2.f32 %v1702_v55 }
 0x2e1   : > { %v1650_v59 = vsub.f32 0.0, %v1618_v54  ;;  %v1619_v61 = vadd.f32 %v3439_v58, %v1582_v31  ;;  %v3608_v36 = vmul.f32 %v2792_v0, %v3517_v41  ;;  %v2796_v19 = vpop.eup %2795  ;;  %v1738_v51 = vadd.f32 1.0, %v2794_v33  ;;  %1960 = vrot.lane.b32.xlu0 %v2788_v18, %s2880_s22 }
 0x2e2   : > { %2815 = vpow2.f32 %v1698_v15  ;;  %v1648_v20 = vsub.f32 0.0, %v1616_v7  ;;  %v1617_v12 = vadd.f32 %v3439_v58, %v1580_v21  ;;  %v2798_v43 = vpop.eup %2797  ;;  %v1736_v1 = vadd.f32 1.0, %v2796_v19  ;;  %v2666_v15 = vpop.f32.mrb[44].mxu0 }
 0x2e3   : > { %v1708_v34 = vmul.f32 1.442695, %v1650_v59  ;;  %v1651_v26 = vsub.f32 0.0, %v1619_v61  ;;  %v3940_v55 = vunpack.c.l.bf16 %v3030_v28  ;;  %v2800_v54 = vpop.eup %2799  ;;  %2817 = vrcp.f32 %v1738_v51  ;;  %1962 = vrot.lane.b32.xlu1 %v2792_v0, %s2880_s22  ;;  %v1535_v59 = vpop.f32.mrb[45].mxu0 }
 0x2e4   : > { %v1739_v41 = vadd.f32 1.0, %v2798_v43  ;;  %v1704_v31 = vmul.f32 1.442695, %v1648_v20  ;;  %v1649_v27 = vsub.f32 0.0, %v1617_v12  ;;  %v2802_v7 = vpop.eup %2801  ;;  %2819 = vrcp.f32 %v1736_v1  ;;  %v2667_v43 = vpop.f32.mrb[46].mxu0 }
 0x2e5   : > { %v3614_v32 = vmul.f32 2.0, %v3940_v55  ;;  %v1737_v21 = vadd.f32 1.0, %v2800_v54  ;;  %v1710_v18 = vmul.f32 1.442695, %v1651_v26  ;;  %v1585_v33 = vmul.f32 %v2666_v15, %v3434_v4  ;;  %v2804_v61 = vpop.eup %2803  ;;  %1972 = vrot.lane.b32.xlu0 %v2802_v7, %s2880_s22  ;;  %v1538_v26 = vpop.f32.mrb[47].mxu0 }
 0x2e6   : > { %2821 = vrcp.f32 %v1739_v41  ;;  %v1706_v19 = vmul.f32 1.442695, %v1649_v27  ;;  %v1583_v51 = vmul.f32 %v3434_v4, %v1535_v59  ;;  %v3621_v20 = vmul.f32 %v2802_v7, %v3523_v56  ;;  %v2806_v0 = vpop.eup %2805 }
 0x2e7   : > { %2823 = vrcp.f32 %v1737_v21  ;;  %v1622_v12 = vadd.f32 %v3439_v58, %v1585_v33  ;;  %v1586_v1 = vmul.f32 %v2667_v43, %v3434_v4  ;;  %v3626_v55 = vmul.f32 %v2804_v61, %v3531_v45  ;;  %v2808_v54 = vpop.eup %2807  ;;  %1974 = vrot.lane.b32.xlu1 %v2806_v0, %s2880_s22 }
 0x2e8   : > { %2825 = vpow2.f32 %v1708_v34  ;;  %v1620_v41 = vadd.f32 %v3439_v58, %v1583_v51  ;;  %v1584_v27 = vmul.f32 %v3434_v4, %v1538_v26  ;;  %v3632_v56 = vmul.f32 %v2806_v0, %v3558_v17  ;;  %v2810_v15 = vpop.eup %2809 }
 0x2e9   : > { %2827 = vpow2.f32 %v1704_v31  ;;  %v1654_v7 = vsub.f32 0.0, %v1622_v12  ;;  %v1623_v21 = vadd.f32 %v3439_v58, %v1586_v1  ;;  %v3636_v33 = vmul.f32 %v2808_v54, %v3588_v39  ;;  %v2812_v45 = vpop.eup %2811  ;;  %1968 = vrot.lane.b32.xlu0 %v2804_v61, %s2880_s22 }
 0x2ea   : > { %v1742_v59 = vadd.f32 1.0, %v2810_v15  ;;  %2829 = vpow2.f32 %v1710_v18  ;;  %v1652_v34 = vsub.f32 0.0, %v1620_v41  ;;  %v1621_v51 = vadd.f32 %v3439_v58, %v1584_v27  ;;  %v2814_v4 = vpop.eup %2813 }
 0x2eb   : > { %v1740_v43 = vadd.f32 1.0, %v2812_v45  ;;  %2831 = vpow2.f32 %v1706_v19  ;;  %v1655_v17 = vsub.f32 0.0, %v1623_v21  ;;  %v3941_v31 = vunpack.c.l.bf16 %v3033_v29  ;;  %1970 = vrot.lane.b32.xlu1 %v2808_v54, %s2880_s22 }
 0x2ec   : > { %v2816_v12 = vpop.eup %2815  ;;  %2833 = vrcp.f32 %v1742_v59  ;;  %v1743_v39 = vadd.f32 1.0, %v2814_v4  ;;  %v1716_v1 = vmul.f32 1.442695, %v1654_v7  ;;  %v1653_v26 = vsub.f32 0.0, %v1621_v51  ;;  %v2865_v59 = vld [vmem:[%s2978_s24 + $0x58] sm:$0xff]   ;;  %v2866_v51 = vld [vmem:[%s2978_s24 + $0x50] sm:$0xff]  }
 0x2ed   : > { %v1832_v0 = vmul.f32 2.0, %v3941_v31  ;;  %2835 = vrcp.f32 %v1740_v43  ;;  %v1741_v58 = vadd.f32 1.0, %v2816_v12  ;;  %v1712_v18 = vmul.f32 1.442695, %v1652_v34  ;;  %v2818_v19 = vpop.eup %2817 }
 0x2ee   : > { %v3942_v61 = vunpack.c.h.bf16 %v3030_v28  ;;  %2837 = vrcp.f32 %v1743_v39  ;;  %v1718_v27 = vmul.f32 1.442695, %v1655_v17  ;;  %v3943_v15 = vunpack.c.h.bf16 %v3033_v29  ;;  %v2820_v45 = vpop.eup %2819  ;;  %1980 = vrot.lane.b32.xlu0 %v2818_v19, %s2880_s22 }
 0x2ef   : > { %v1806_v4 = vunpack.c.l.bf16 %v2865_v59  ;;  %2839 = vrcp.f32 %v1741_v58  ;;  %v1714_v7 = vmul.f32 1.442695, %v1653_v26  ;;  %v3650_v54 = vmul.f32 %v2818_v19, %v3614_v32 }
 0x2f0   : > { %v1835_v41 = vmul.f32 2.0, %v3942_v61  ;;  %v1833_v21 = vmul.f32 2.0, %v3943_v15  ;;  %v2822_v34 = vpop.eup %2821  ;;  %v1804_v28 = vunpack.c.l.bf16 %v2866_v51  ;;  %2841 = vpow2.f32 %v1716_v1 }
 0x2f1   : > { %v3653_v43 = vmul.f32 %v2820_v45, %v1832_v0  ;;  %v2824_v17 = vpop.eup %2823  ;;  %v1807_v31 = vunpack.c.h.bf16 %v2865_v59  ;;  %2843 = vpow2.f32 %v1712_v18  ;;  %1982 = vrot.lane.b32.xlu1 %v2822_v34, %s2880_s22  ;;  %v1805_v39 = vunpack.c.h.bf16 %v2866_v51 }
 0x2f2   : > { %v3656_v29 = vmul.f32 %v2822_v34, %v1835_v41  ;;  %v2826_v12 = vpop.eup %2825  ;;  %2845 = vpow2.f32 %v1718_v27  ;;  %v3658_v26 = vmul.f32 %v2824_v17, %v1833_v21  ;;  %1976 = vrot.lane.b32.xlu0 %v2820_v45, %s2880_s22  ;;  %v1838_v1 = vmul.f32 2.0, %v1806_v4 }
 0x2f3   : > { %v2828_v32 = vpop.eup %2827  ;;  %v1746_v58 = vadd.f32 1.0, %v2826_v12  ;;  %2847 = vpow2.f32 %v1714_v7  ;;  %v1836_v19 = vmul.f32 2.0, %v1804_v28  ;;  %v1839_v41 = vmul.f32 2.0, %v1807_v31  ;;  %v2867_v7 = vld [vmem:[%s2978_s24 + $0x68] sm:$0xff]  }
 0x2f4   : > { %v2830_v0 = vpop.eup %2829  ;;  %v1744_v61 = vadd.f32 1.0, %v2828_v32  ;;  %v1837_v59 = vmul.f32 2.0, %v1805_v39  ;;  %v1810_v51 = vunpack.c.l.bf16 %v2867_v7 }
 0x2f5   : > { %v2832_v18 = vpop.eup %2831  ;;  %2849 = vrcp.f32 %v1746_v58  ;;  %v1747_v15 = vadd.f32 1.0, %v2830_v0  ;;  %1978 = vrot.lane.b32.xlu1 %v2824_v17, %s2880_s22  ;;  %v2868_v17 = vld [vmem:[%s2978_s24 + $0x60] sm:$0xff]   ;;  %v1811_v58 = vunpack.c.h.bf16 %v2867_v7 }
 0x2f6   : > { %v2834_v27 = vpop.eup %2833  ;;  %2851 = vrcp.f32 %v1744_v61  ;;  %v1745_v21 = vadd.f32 1.0, %v2832_v18  ;;  %v1808_v32 = vunpack.c.l.bf16 %v2868_v17 }
 0x2f7   : > { %v2836_v34 = vpop.eup %2835  ;;  %2853 = vrcp.f32 %v1747_v15  ;;  %1988 = vrot.lane.b32.xlu0 %v2834_v27, %s2880_s22  ;;  %v3663_v45 = vmul.f32 %v2834_v27, %v1838_v1  ;;  %v1809_v1 = vunpack.c.h.bf16 %v2868_v17  ;;  %v1842_v27 = vmul.f32 2.0, %v1810_v51 }
 0x2f8   : > { %v2838_v4 = vpop.eup %2837  ;;  %2855 = vrcp.f32 %v1745_v21  ;;  %v3666_v28 = vmul.f32 %v2836_v34, %v1836_v19 }
 0x2f9   : > { %v2840_v12 = vpop.eup %2839  ;;  %1990 = vrot.lane.b32.xlu1 %v2838_v4, %s2880_s22  ;;  %v3670_v31 = vmul.f32 %v2838_v4, %v1839_v41  ;;  %v1840_v41 = vmul.f32 2.0, %v1808_v32  ;;  %v1841_v17 = vmul.f32 2.0, %v1809_v1 }
 0x2fa   : > { %3944 = vst [vmem:[#allocation12_spill] sm:$0xff] %v3666_v28  ;;  %v2842_v39 = vpop.eup %2841  ;;  %v3672_v0 = vmul.f32 %v2840_v12, %v1837_v59  ;;  %v1843_v59 = vmul.f32 2.0, %v1811_v58 }
 0x2fb   : > { %3945 = vst [vmem:[#allocation13_spill] sm:$0xff] %v3670_v31  ;;  %v2844_v61 = vpop.eup %2843  ;;  %v1750_v18 = vadd.f32 1.0, %v2842_v39  ;;  %1984 = vrot.lane.b32.xlu0 %v2836_v34, %s2880_s22 }
 0x2fc   : > { %3946 = vst [vmem:[#allocation14_spill] sm:$0xff] %v3672_v0  ;;  %v2846_v15 = vpop.eup %2845  ;;  %v1748_v19 = vadd.f32 1.0, %v2844_v61  ;;  %v2869_v0 = vld [vmem:[%s2978_s24 + $0x78] sm:$0xff]  }
 0x2fd   : > { %v2848_v21 = vpop.eup %2847  ;;  %2857 = vrcp.f32 %v1750_v18  ;;  %v1751_v28 = vadd.f32 1.0, %v2846_v15  ;;  %1986 = vrot.lane.b32.xlu1 %v2840_v12, %s2880_s22  ;;  %v1814_v34 = vunpack.c.l.bf16 %v2869_v0  ;;  %v2870_v18 = vld [vmem:[%s2978_s24 + $0x70] sm:$0xff]   ;;  %v1815_v32 = vunpack.c.h.bf16 %v2869_v0 }
 0x2fe   : > { %2859 = vrcp.f32 %v1748_v19  ;;  %v1749_v4 = vadd.f32 1.0, %v2848_v21  ;;  %v1812_v15 = vunpack.c.l.bf16 %v2870_v18 }
 0x2ff   : > { %v2850_v7 = vpop.eup %2849  ;;  %2861 = vrcp.f32 %v1751_v28  ;;  %v1813_v28 = vunpack.c.h.bf16 %v2870_v18  ;;  %v1846_v19 = vmul.f32 2.0, %v1814_v34  ;;  %v3948_v34 = vmax.f32 %v3076_v47, 0.0 }
 0x300   : > { %v2852_v39 = vpop.eup %2851  ;;  %2863 = vrcp.f32 %v1749_v4  ;;  %1996 = vrot.lane.b32.xlu0 %v2850_v7, %s2880_s22  ;;  %v3678_v51 = vmul.f32 %v2850_v7, %v1842_v27  ;;  %v1844_v21 = vmul.f32 2.0, %v1812_v15  ;;  %v1847_v27 = vmul.f32 2.0, %v1815_v32 }
 0x301   : > { %v2854_v61 = vpop.eup %2853  ;;  %v3681_v31 = vmul.f32 %v2852_v39, %v1840_v41  ;;  %v1845_v7 = vmul.f32 2.0, %v1813_v28  ;;  %v1882_v18 = vmul.f32 2.0, %v3948_v34  ;;  %v3949_v32 = vmax.f32 %v3084_v52, 0.0 }
 0x302   : > { %v2856_v12 = vpop.eup %2855  ;;  %1998 = vrot.lane.b32.xlu1 %v2854_v61, %s2880_s22  ;;  %v3684_v58 = vmul.f32 %v2854_v61, %v1843_v59 }
 0x303   : > { %3947 = vst [vmem:[#allocation15_spill] sm:$0xff] %v3681_v31  ;;  %v3686_v1 = vmul.f32 %v2856_v12, %v1841_v17  ;;  %v1883_v28 = vmul.f32 2.0, %v3949_v32 }
 0x304   : > { %1992 = vrot.lane.b32.xlu0 %v2852_v39, %s2880_s22 }
 0x306   : > { %1994 = vrot.lane.b32.xlu1 %v2856_v12, %s2880_s22 }
 0x307   : > { %v2858_v4 = vpop.eup %2857 }
 0x308   : > { %v2860_v41 = vpop.eup %2859  ;;  %v3690_v31 = vmul.f32 %v2858_v4, %v1846_v19 }
 0x309   : > { %v2862_v0 = vpop.eup %2861  ;;  %2000 = vrot.lane.b32.xlu0 %v2860_v41, %s2880_s22  ;;  %v3693_v59 = vmul.f32 %v2860_v41, %v1844_v21  ;;  %v3950_v41 = vmax.f32 %v3080_v50, 0.0 }
 0x30a   : > { %v2864_v17 = vpop.eup %2863  ;;  %v3695_v61 = vmul.f32 %v2862_v0, %v1847_v27 }
 0x30b   : > { %2002 = vrot.lane.b32.xlu1 %v2864_v17, %s2880_s22  ;;  %v3698_v39 = vmul.f32 %v2864_v17, %v1845_v7  ;;  %v1880_v7 = vmul.f32 2.0, %v3950_v41 }
 0x30d   : > { %2004 = vrot.lane.b32.xlu0 %v2858_v4, %s2880_s22 }
 0x30f   : > { %2006 = vrot.lane.b32.xlu1 %v2862_v0, %s2880_s22 }
 0x33d   : > { %v1949_v15 = vpop.permute.xlu0 %1948 }
 0x33e   : > { %v2042_v12 = vmul.f32 %v1949_v15, %v1882_v18 }
 0x33f   : > { %v1951_v19 = vpop.permute.xlu1 %1950 }
 0x340   : > { %v2074_v21 = vadd.f32 %v2042_v12, %v3536_v22  ;;  %v2043_v27 = vmul.f32 %v1951_v19, %v1883_v28  ;;  %v3951_v22 = vmax.f32 %v3087_v53, 0.0  ;;  %v3952_v12 = vmax.f32 %v3106_v8, 0.0 }
 0x341   : > { %v1945_v47 = vpop.permute.xlu0 %1944 }
 0x342   : > { %v2473_v4 = vpack.c.bf16 %v2074_v21, %v2074_v21  ;;  %v2075_v52 = vadd.f32 %v2043_v27, %v3546_v42  ;;  %v2040_v0 = vmul.f32 %v1945_v47, %v1880_v7  ;;  %v1881_v17 = vmul.f32 2.0, %v3951_v22 }
 0x343   : > { %v1947_v34 = vpop.permute.xlu1 %1946  ;;  %v1886_v32 = vmul.f32 2.0, %v3952_v12  ;;  %v3953_v21 = vmax.f32 %v3122_v24, 0.0  ;;  %v3954_v47 = vmax.f32 %v3114_v14, 0.0  ;;  %v3955_v22 = vmax.f32 %v3127_v30, 0.0 }
 0x344   : > { %2235 = vst.msk [vmem:[%s3713_s25 + $0x8] sm:$0xf] %vm2232_vm3, %v2473_v4  ;;  %v2474_v50 = vpack.c.bf16 %v2075_v52, %v2075_v52  ;;  %v2072_v18 = vadd.f32 %v2040_v0, %v3540_v38  ;;  %v2041_v15 = vmul.f32 %v1947_v34, %v1881_v17 }
 0x345   : > { %v1887_v27 = vmul.f32 2.0, %v3953_v21  ;;  %v1884_v4 = vmul.f32 2.0, %v3954_v47  ;;  %v1885_v17 = vmul.f32 2.0, %v3955_v22  ;;  %v3958_v21 = vmax.f32 %v3171_v10, 0.0 }
 0x346   : > { %v1957_v28 = vpop.permute.xlu0 %1956  ;;  %2236 = vst.msk [vmem:[%s3713_s25 + $0xc] sm:$0xf] %vm2232_vm3, %v2474_v50  ;;  %v2471_v42 = vpack.c.bf16 %v2072_v18, %v2072_v18  ;;  %v2073_v19 = vadd.f32 %v2041_v15, %v3551_v63  ;;  %v3956_v18 = vmax.f32 %v3159_v2, 0.0  ;;  %v3961_v22 = vmax.f32 %v3242_v40, 0.0 }
 0x347   : > { %v2046_v53 = vmul.f32 %v1957_v28, %v1886_v32  ;;  %v3957_v28 = vmax.f32 %v3182_v23, 0.0 }
 0x348   : > { %v1959_v41 = vpop.permute.xlu1 %1958  ;;  %2233 = vst.msk [vmem:[%s3713_s25] sm:$0xf] %vm2232_vm3, %v2471_v42  ;;  %v2472_v38 = vpack.c.bf16 %v2073_v19, %v2073_v19  ;;  %v1890_v15 = vmul.f32 2.0, %v3956_v18 }
 0x349   : > { %v2078_v7 = vadd.f32 %v2046_v53, %v3564_v9  ;;  %v2047_v8 = vmul.f32 %v1959_v41, %v1887_v27  ;;  %v1891_v42 = vmul.f32 2.0, %v3957_v28  ;;  %v1888_v27 = vmul.f32 2.0, %v3958_v21 }
 0x34a   : > { %v1953_v52 = vpop.permute.xlu0 %1952  ;;  %2234 = vst.msk [vmem:[%s3713_s25 + $0x4] sm:$0xf] %vm2232_vm3, %v2472_v38  ;;  %v3964_v28 = vmax.f32 %v3110_v11, 0.0 }
 0x34b   : > { %v2477_v63 = vpack.c.bf16 %v2078_v7, %v2078_v7  ;;  %v2079_v0 = vadd.f32 %v2047_v8, %v3574_v13  ;;  %v2044_v24 = vmul.f32 %v1953_v52, %v1884_v4  ;;  %v3959_v7 = vmax.f32 %v3189_v25, 0.0 }
 0x34c   : > { %v1955_v34 = vpop.permute.xlu1 %1954  ;;  %v3960_v52 = vmax.f32 %v3223_v60, 0.0 }
 0x34d   : > { %2239 = vst.msk [vmem:[%s3713_s25 + $0x18] sm:$0xf] %vm2232_vm3, %v2477_v63  ;;  %v2478_v50 = vpack.c.bf16 %v2079_v0, %v2079_v0  ;;  %v2076_v9 = vadd.f32 %v2044_v24, %v3568_v5  ;;  %v2045_v14 = vmul.f32 %v1955_v34, %v1885_v17  ;;  %v1889_v8 = vmul.f32 2.0, %v3959_v7 }
 0x34e   : > { %v1894_v63 = vmul.f32 2.0, %v3960_v52  ;;  %v1895_v17 = vmul.f32 2.0, %v3961_v22  ;;  %v3967_v7 = vmax.f32 %v3143_v44, 0.0  ;;  %v3970_v22 = vld [vmem:[#allocation2_spill] sm:$0xff] }
 0x34f   : > { %2240 = vst.msk [vmem:[%s3713_s25 + $0x1c] sm:$0xf] %vm2232_vm3, %v2478_v50  ;;  %v2475_v12 = vpack.c.bf16 %v2076_v9, %v2076_v9  ;;  %v2077_v13 = vadd.f32 %v2045_v14, %v3579_v46  ;;  %v1965_v32 = vpop.permute.xlu0 %1964  ;;  %v3962_v9 = vmax.f32 %v3231_v6, 0.0 }
 0x350   : > { %v2050_v30 = vmul.f32 %v1965_v32, %v1890_v15 }
 0x351   : > { %2237 = vst.msk [vmem:[%s3713_s25 + $0x10] sm:$0xf] %vm2232_vm3, %v2475_v12  ;;  %v2476_v19 = vpack.c.bf16 %v2077_v13, %v2077_v13  ;;  %v1967_v53 = vpop.permute.xlu1 %1966  ;;  %v1892_v14 = vmul.f32 2.0, %v3962_v9  ;;  %v3963_v12 = vmax.f32 %v3248_v35, 0.0  ;;  %v3973_v9 = vld [vmem:[#allocation3_spill] sm:$0xff] }
 0x352   : > { %v2082_v5 = vadd.f32 %v2050_v30, %v3593_v3  ;;  %v2051_v2 = vmul.f32 %v1967_v53, %v1891_v42  ;;  %v1898_v42 = vmul.f32 2.0, %v3964_v28 }
 0x353   : > { %2238 = vst.msk [vmem:[%s3713_s25 + $0x14] sm:$0xf] %vm2232_vm3, %v2476_v19  ;;  %v1961_v46 = vpop.permute.xlu0 %1960  ;;  %v1893_v13 = vmul.f32 2.0, %v3963_v12 }
 0x354   : > { %v2481_v41 = vpack.c.bf16 %v2082_v5, %v2082_v5  ;;  %v2083_v38 = vadd.f32 %v2051_v2, %v3604_v49  ;;  %v2048_v23 = vmul.f32 %v1961_v46, %v1888_v27  ;;  %v3965_v5 = vmax.f32 %v3137_v37, 0.0 }
 0x355   : > { %v1963_v47 = vpop.permute.xlu1 %1962  ;;  %v3966_v46 = vmax.f32 %v3118_v16, 0.0 }
 0x356   : > { %2243 = vst.msk [vmem:[%s3713_s25 + $0x28] sm:$0xf] %vm2232_vm3, %v2481_v41  ;;  %v2482_v3 = vpack.c.bf16 %v2083_v38, %v2083_v38  ;;  %v2080_v4 = vadd.f32 %v2048_v23, %v3598_v48  ;;  %v2049_v10 = vmul.f32 %v1963_v47, %v1889_v8  ;;  %v1899_v2 = vmul.f32 2.0, %v3965_v5 }
 0x357   : > { %v1973_v0 = vpop.permute.xlu0 %1972  ;;  %v1896_v41 = vmul.f32 2.0, %v3966_v46  ;;  %v1897_v8 = vmul.f32 2.0, %v3967_v7 }
 0x358   : > { %2244 = vst.msk [vmem:[%s3713_s25 + $0x2c] sm:$0xf] %vm2232_vm3, %v2482_v3  ;;  %v2479_v49 = vpack.c.bf16 %v2080_v4, %v2080_v4  ;;  %v2081_v24 = vadd.f32 %v2049_v10, %v3608_v36  ;;  %v2054_v25 = vmul.f32 %v1973_v0, %v1894_v63  ;;  %v3968_v4 = vmax.f32 %v3186_v57, 0.0 }
 0x359   : > { %v1975_v34 = vpop.permute.xlu1 %1974  ;;  %v3969_v0 = vmax.f32 %v3204_v62, 0.0 }
 0x35a   : > { %2241 = vst.msk [vmem:[%s3713_s25 + $0x20] sm:$0xf] %vm2232_vm3, %v2479_v49  ;;  %v2480_v48 = vpack.c.bf16 %v2081_v24, %v2081_v24  ;;  %v2086_v50 = vadd.f32 %v2054_v25, %v3621_v20  ;;  %v2055_v60 = vmul.f32 %v1975_v34, %v1895_v17  ;;  %v1902_v10 = vmul.f32 2.0, %v3968_v4  ;;  %v3986_v4 = vld [vmem:[#allocation9_spill] sm:$0xff] }
 0x35b   : > { %v1969_v18 = vpop.permute.xlu0 %1968  ;;  %v1903_v49 = vmul.f32 2.0, %v3969_v0  ;;  %v3971_v17 = vmax.f32 %v3970_v22, 0.0  ;;  %v3988_v0 = vld [vmem:[#allocation11_spill] sm:$0xff] }
 0x35c   : > { %2242 = vst.msk [vmem:[%s3713_s25 + $0x24] sm:$0xf] %vm2232_vm3, %v2480_v48  ;;  %v2485_v36 = vpack.c.bf16 %v2086_v50, %v2086_v50  ;;  %v2087_v15 = vadd.f32 %v2055_v60, %v3632_v56  ;;  %v2052_v40 = vmul.f32 %v1969_v18, %v1892_v14  ;;  %v3972_v50 = vld [vmem:[#allocation13_spill] sm:$0xff]  ;;  %v3974_v14 = vmax.f32 %v3973_v9, 0.0 }
 0x35d   : > { %v1971_v32 = vpop.permute.xlu1 %1970  ;;  %v1900_v34 = vmul.f32 2.0, %v3971_v17  ;;  %v3990_v17 = vld [vmem:[#allocation8_spill] sm:$0xff] }
 0x35e   : > { %2247 = vst.msk [vmem:[%s3713_s25 + $0x38] sm:$0xf] %vm2232_vm3, %v2485_v36  ;;  %v2486_v30 = vpack.c.bf16 %v2087_v15, %v2087_v15  ;;  %v2084_v20 = vadd.f32 %v2052_v40, %v3626_v55  ;;  %v2053_v6 = vmul.f32 %v1971_v32, %v1893_v13  ;;  %v1901_v18 = vmul.f32 2.0, %v3974_v14  ;;  %v3976_v13 = vld [vmem:[#allocation4_spill] sm:$0xff] }
 0x35f   : > { %v3977_v32 = vmax.f32 %v3976_v13, 0.0 }
 0x360   : > { %2248 = vst.msk [vmem:[%s3713_s25 + $0x3c] sm:$0xf] %vm2232_vm3, %v2486_v30  ;;  %v2483_v19 = vpack.c.bf16 %v2084_v20, %v2084_v20  ;;  %v2085_v56 = vadd.f32 %v2053_v6, %v3636_v33  ;;  %v1981_v53 = vpop.permute.xlu0 %1980  ;;  %v3978_v6 = vld [vmem:[#allocation14_spill] sm:$0xff] }
 0x361   : > { %v2058_v35 = vmul.f32 %v1981_v53, %v1898_v42  ;;  %v1906_v30 = vmul.f32 2.0, %v3977_v32 }
 0x362   : > { %2245 = vst.msk [vmem:[%s3713_s25 + $0x30] sm:$0xf] %vm2232_vm3, %v2483_v19  ;;  %v2484_v21 = vpack.c.bf16 %v2085_v56, %v2085_v56  ;;  %v3979_v56 = vld [vmem:[#allocation6_spill] sm:$0xff] }
 0x363   : > { %v1983_v27 = vpop.permute.xlu1 %1982  ;;  %v2090_v55 = vadd.f32 %v2058_v35, %v3650_v54  ;;  %v3980_v53 = vmax.f32 %v3979_v56, 0.0 }
 0x364   : > { %v2059_v11 = vmul.f32 %v1983_v27, %v1899_v2  ;;  %2246 = vst.msk [vmem:[%s3713_s25 + $0x34] sm:$0xf] %vm2232_vm3, %v2484_v21  ;;  %v1977_v33 = vpop.permute.xlu0 %1976 }
 0x365   : > { %v2489_v38 = vpack.c.bf16 %v2090_v55, %v2090_v55  ;;  %v2056_v37 = vmul.f32 %v1977_v33, %v1896_v41  ;;  %v1907_v35 = vmul.f32 2.0, %v3980_v53  ;;  %v3981_v55 = vld [vmem:[#allocation5_spill] sm:$0xff] }
 0x366   : > { %v2091_v23 = vadd.f32 %v2059_v11, %v3656_v29  ;;  %v3982_v11 = vmax.f32 %v3981_v55, 0.0 }
 0x367   : > { %v1979_v47 = vpop.permute.xlu1 %1978  ;;  %2251 = vst.msk [vmem:[%s3713_s25 + $0x48] sm:$0xf] %vm2232_vm3, %v2489_v38  ;;  %v2088_v3 = vadd.f32 %v2056_v37, %v3653_v43  ;;  %v3983_v37 = vld [vmem:[#allocation7_spill] sm:$0xff] }
 0x368   : > { %v2490_v54 = vpack.c.bf16 %v2091_v23, %v2091_v23  ;;  %v2057_v16 = vmul.f32 %v1979_v47, %v1897_v8  ;;  %v1904_v46 = vmul.f32 2.0, %v3982_v11  ;;  %v3984_v7 = vmax.f32 %v3983_v37, 0.0 }
 0x369   : > { %v1989_v52 = vpop.permute.xlu0 %1988  ;;  %v2487_v29 = vpack.c.bf16 %v2088_v3, %v2088_v3 }
 0x36a   : > { %2252 = vst.msk [vmem:[%s3713_s25 + $0x4c] sm:$0xf] %vm2232_vm3, %v2490_v54  ;;  %v2089_v63 = vadd.f32 %v2057_v16, %v3658_v26  ;;  %v2062_v44 = vmul.f32 %v1989_v52, %v1902_v10  ;;  %v1905_v8 = vmul.f32 2.0, %v3984_v7  ;;  %v3987_v10 = vmax.f32 %v3986_v4, 0.0 }
 0x36b   : > { %v1991_v24 = vpop.permute.xlu1 %1990  ;;  %2249 = vst.msk [vmem:[%s3713_s25 + $0x40] sm:$0xf] %vm2232_vm3, %v2487_v29 }
 0x36c   : > { %v2488_v43 = vpack.c.bf16 %v2089_v63, %v2089_v63  ;;  %v2094_v25 = vadd.f32 %v2062_v44, %v3663_v45  ;;  %v2063_v57 = vmul.f32 %v1991_v24, %v1903_v49  ;;  %v3975_v45 = vld [vmem:[#allocation12_spill] sm:$0xff]  ;;  %v1908_v52 = vmul.f32 2.0, %v3987_v10 }
 0x36d   : > { %v1985_v48 = vpop.permute.xlu0 %1984  ;;  %v3989_v49 = vmax.f32 %v3988_v0, 0.0 }
 0x36e   : > { %2250 = vst.msk [vmem:[%s3713_s25 + $0x44] sm:$0xf] %vm2232_vm3, %v2488_v43  ;;  %v2493_v26 = vpack.c.bf16 %v2094_v25, %v2094_v25  ;;  %v2095_v60 = vadd.f32 %v2063_v57, %v3972_v50  ;;  %v2060_v62 = vmul.f32 %v1985_v48, %v1900_v34  ;;  %v3991_v34 = vmax.f32 %v3990_v17, 0.0 }
 0x36f   : > { %v1987_v36 = vpop.permute.xlu1 %1986  ;;  %v1909_v24 = vmul.f32 2.0, %v3989_v49 }
 0x370   : > { %2255 = vst.msk [vmem:[%s3713_s25 + $0x58] sm:$0xf] %vm2232_vm3, %v2493_v26  ;;  %v2494_v15 = vpack.c.bf16 %v2095_v60, %v2095_v60  ;;  %v2092_v40 = vadd.f32 %v2060_v62, %v3975_v45  ;;  %v2061_v12 = vmul.f32 %v1987_v36, %v1901_v18  ;;  %v1910_v48 = vmul.f32 2.0, %v3991_v34  ;;  %v3992_v62 = vld [vmem:[#allocation10_spill] sm:$0xff] }
 0x371   : > { %v3993_v9 = vmax.f32 %v3992_v62, 0.0 }
 0x372   : > { %2256 = vst.msk [vmem:[%s3713_s25 + $0x5c] sm:$0xf] %vm2232_vm3, %v2494_v15  ;;  %v2491_v20 = vpack.c.bf16 %v2092_v40, %v2092_v40  ;;  %v2093_v28 = vadd.f32 %v2061_v12, %v3978_v6  ;;  %v1997_v42 = vpop.permute.xlu0 %1996 }
 0x373   : > { %v2066_v19 = vmul.f32 %v1997_v42, %v1906_v30  ;;  %v1911_v14 = vmul.f32 2.0, %v3993_v9 }
 0x374   : > { %2253 = vst.msk [vmem:[%s3713_s25 + $0x50] sm:$0xf] %vm2232_vm3, %v2491_v20  ;;  %v2492_v5 = vpack.c.bf16 %v2093_v28, %v2093_v28  ;;  %v1999_v2 = vpop.permute.xlu1 %1998 }
 0x375   : > { %v2098_v21 = vadd.f32 %v2066_v19, %v3678_v51  ;;  %v2067_v27 = vmul.f32 %v1999_v2, %v1907_v35  ;;  %v3985_v51 = vld [vmem:[#allocation15_spill] sm:$0xff] }
 0x376   : > { %2254 = vst.msk [vmem:[%s3713_s25 + $0x54] sm:$0xf] %vm2232_vm3, %v2492_v5  ;;  %v1993_v41 = vpop.permute.xlu0 %1992 }
 0x377   : > { %v2497_v33 = vpack.c.bf16 %v2098_v21, %v2098_v21  ;;  %v2099_v38 = vadd.f32 %v2067_v27, %v3684_v58  ;;  %v2064_v23 = vmul.f32 %v1993_v41, %v1904_v46 }
 0x378   : > { %v1995_v47 = vpop.permute.xlu1 %1994 }
 0x379   : > { %2259 = vst.msk [vmem:[%s3713_s25 + $0x68] sm:$0xf] %vm2232_vm3, %v2497_v33  ;;  %v2498_v54 = vpack.c.bf16 %v2099_v38, %v2099_v38  ;;  %v2096_v3 = vadd.f32 %v2064_v23, %v3985_v51  ;;  %v2065_v16 = vmul.f32 %v1995_v47, %v1905_v8 }
 0x37b   : > { %2260 = vst.msk [vmem:[%s3713_s25 + $0x6c] sm:$0xf] %vm2232_vm3, %v2498_v54  ;;  %v2495_v29 = vpack.c.bf16 %v2096_v3, %v2096_v3  ;;  %v2097_v58 = vadd.f32 %v2065_v16, %v3686_v1  ;;  %v2001_v63 = vpop.permute.xlu0 %2000 }
 0x37c   : > { %v2068_v44 = vmul.f32 %v2001_v63, %v1908_v52 }
 0x37d   : > { %2257 = vst.msk [vmem:[%s3713_s25 + $0x60] sm:$0xf] %vm2232_vm3, %v2495_v29  ;;  %v2496_v43 = vpack.c.bf16 %v2097_v58, %v2097_v58  ;;  %v2003_v25 = vpop.permute.xlu1 %2002 }
 0x37e   : > { %v2100_v57 = vadd.f32 %v2068_v44, %v3693_v59  ;;  %v2069_v22 = vmul.f32 %v2003_v25, %v1909_v24 }
 0x37f   : > { %2258 = vst.msk [vmem:[%s3713_s25 + $0x64] sm:$0xf] %vm2232_vm3, %v2496_v43  ;;  %v2005_v1 = vpop.permute.xlu0 %2004 }
 0x380   : > { %v2499_v26 = vpack.c.bf16 %v2100_v57, %v2100_v57  ;;  %v2101_v50 = vadd.f32 %v2069_v22, %v3698_v39  ;;  %v2070_v60 = vmul.f32 %v2005_v1, %v1910_v48 }
 0x381   : > { %v2007_v18 = vpop.permute.xlu1 %2006 }
 0x382   : > { %2261 = vst.msk [vmem:[%s3713_s25 + $0x70] sm:$0xf] %vm2232_vm3, %v2499_v26  ;;  %v2500_v59 = vpack.c.bf16 %v2101_v50, %v2101_v50  ;;  %v2102_v36 = vadd.f32 %v2070_v60, %v3690_v31  ;;  %v2071_v15 = vmul.f32 %v2007_v18, %v1911_v14 }
 0x384   : > { %2262 = vst.msk [vmem:[%s3713_s25 + $0x74] sm:$0xf] %vm2232_vm3, %v2500_v59  ;;  %v2501_v45 = vpack.c.bf16 %v2102_v36, %v2102_v36  ;;  %v2103_v40 = vadd.f32 %v2071_v15, %v3695_v61 }
 0x386   : > { %2263 = vst.msk [vmem:[%s3713_s25 + $0x78] sm:$0xf] %vm2232_vm3, %v2501_v45  ;;  %v2502_v12 = vpack.c.bf16 %v2103_v40, %v2103_v40 }
 0x388   : > { %2264 = vst.msk [vmem:[%s3713_s25 + $0x7c] sm:$0xf] %vm2232_vm3, %v2502_v12 }
 0x389 PF: > { %s18_s27 = sadd.s32 1, %s2877_s27  }
 0x38a   : > { %p15_p4 = scmp.ge.s32.totalorder %s18_s27, 4  }
 0x38c   :  { %17 = sbr.rel (!%p15_p4) target bundleno = 1 (0x1), region = 85 }

</bundles_post_ra>
